<compile_context>
chip_gen: v6e
topology: v6e:2x2x1
jax: 0.10.0
libtpu: 0.0.40
codegen_flags: <defaults>
</compile_context>

<pallas_src>
import functools

import jax
import jax.numpy as jnp
from jax import lax
from jax.experimental import pallas as pl
from jax.experimental.pallas import tpu as pltpu

_LOG_F32_MAX = 88.72  # ln(float32 max); exp(x) overflows for x above this


def _round_up(x, m):
    return ((x + m - 1) // m) * m


def _palm_kernel(feat_ref, proto_ref, idx_ref, newproto_ref, loss_ref, *,
                 n_valid, p_valid, epsilon, proto_m, temp,
                 sinkhorn_iterations):
    """Fused PALM forward: sinkhorn, proto EMA update, MLE CE, proto contra."""
    f_bf = feat_ref[...]          # [Np, D] bf16 (rows >= n_valid are zero pad)
    p = proto_ref[...]            # [Pp, D] f32  (rows >= p_valid are zero pad)
    idx = idx_ref[...]            # [Np, 1] int32 prototype-pair index (-1 = unknown)
    Np, D = f_bf.shape
    Pp = p.shape[0]

    inv_eps = 1.0 / epsilon
    inv_temp = 1.0 / temp
    inv_K = 1.0 / float(p_valid)
    inv_B = 1.0 / float(n_valid)
    neg_inf = float("-inf")

    # Validity masks for the lane/sublane padding (static extents) and the
    # in-kernel target->prototype-pair one-hot mask (replaces the host mask).
    col_iota = lax.broadcasted_iota(jnp.int32, (1, Pp), 1)                 # [1,Pp]
    col_valid = col_iota < p_valid
    row_valid = lax.broadcasted_iota(jnp.int32, (Np, 1), 0) < n_valid      # [Np,1]
    np_valid = jnp.logical_and(row_valid, col_valid)                       # [Np,Pp]
    row_valid_f = row_valid.astype(jnp.float32)
    m_bool = (col_iota >> 1) == idx                                        # [Np,Pp]

    nt = (((1,), (1,)), ((), ()))          # contract over D
    p_bf = p.astype(jnp.bfloat16)

    # ---- sinkhorn logits: one matmul.  The torch isinf-renorm branch only
    # rescales columns of `out` by 1/||p_k||, so no second matmul is needed.
    out0 = lax.dot_general(f_bf, p_bf, nt,
                           preferred_element_type=jnp.float32)             # [Np,Pp]

    m0 = jnp.max(jnp.where(np_valid, out0, neg_inf))
    # torch checks isinf(sum(exp(out/eps))); element-level surrogate
    # (any single exp overflowing) - identical unless only the sum overflows.
    need_renorm = (m0 * inv_eps) > _LOG_F32_MAX

    # Per-prototype inverse L2 norms; row form via a tiny [Pp,1]->[1,Pp]
    # transpose (XLU) instead of the previous f32 ones-matmul.
    inv_norm_col = lax.rsqrt(
        jnp.maximum(jnp.sum(p * p, axis=1, keepdims=True), 1e-24))         # [Pp,1]
    inv_norm_row = jnp.transpose(inv_norm_col, (1, 0))                     # [1,Pp]

    col_scale = jnp.where(need_renorm, inv_norm_row,
                          jnp.ones((1, Pp), jnp.float32))
    out = out0 * col_scale                                                 # [Np,Pp]
    p_sel = jnp.where(need_renorm, p * inv_norm_col, p)                    # [Pp,D]

    # ---- sinkhorn iterations; qt[n, k] == torch Q[k, n].
    # Global max-shift + padded entries set to -inf -> exp gives exact zeros
    # on padding and never overflows; the shift (and torch's Q /= sum_Q) is
    # absorbed exactly by the first column normalization.
    out_m = jnp.where(np_valid, out, neg_inf)
    m_out = jnp.max(out_m)
    qt = jnp.exp((out_m - m_out) * inv_eps)                                # [Np,Pp]
    for _ in range(sinkhorn_iterations):
        colsum = jnp.sum(qt, axis=0, keepdims=True)                        # [1,Pp]
        qt = qt * (pl.reciprocal(jnp.maximum(colsum, 1e-12), approx=True) * inv_K)
        rowsum = jnp.sum(qt, axis=1, keepdims=True)                        # [Np,1]
        qt = qt * (pl.reciprocal(jnp.maximum(rowsum, 1e-12), approx=True) * inv_B)
    # torch's final `Q *= B` is folded into the scalar factor on `upd` below
    # (saves a full [Np,Pp] sweep).

    # ---- prototype EMA update + L2 renorm (padded rows stay zero).
    q_masked = jnp.where(m_bool, qt, 0.0).astype(jnp.bfloat16)             # [Np,Pp]
    # TODO(synk): inspect MLIR on v6e/v7x - if this dim-0 contraction emits
    # vxpose sweeps of the large N-major operands, restructure (transpose the
    # small tile only / fold into the N-tiled accumulation).
    upd = lax.dot_general(q_masked, f_bf,
                          (((0,), (0,)), ((), ())),
                          preferred_element_type=jnp.float32)              # [Pp,D]
    newp = proto_m * p_sel + ((1.0 - proto_m) * float(n_valid)) * upd
    newp = newp * lax.rsqrt(
        jnp.maximum(jnp.sum(newp * newp, axis=1, keepdims=True), 1e-24))
    newproto_ref[...] = newp

    # ---- MLE contrastive loss against updated (detached) prototypes.
    newp_bf = newp.astype(jnp.bfloat16)
    logits = lax.dot_general(f_bf, newp_bf, nt,
                             preferred_element_type=jnp.float32) * inv_temp
    logits_cm = jnp.where(col_valid, logits, neg_inf)
    lmax = jnp.max(logits_cm, axis=1, keepdims=True)                       # [Np,1]
    le = jnp.exp(logits_cm - lmax)      # per-row shift cancels in num/den ratio
    num = jnp.sum(jnp.where(m_bool, le, 0.0), axis=1, keepdims=True) + 1e-12
    den = jnp.sum(le, axis=1, keepdims=True) + 1e-12
    per_row = (jnp.log(den) - jnp.log(num)) * row_valid_f
    mle = jnp.sum(per_row) * inv_B

    # ---- proto_contra (fused; newp rows are already unit L2-norm).
    adc = lax.dot_general(newp_bf, newp_bf, nt,
                          preferred_element_type=jnp.float32) * 2.0        # /0.5
    r_idx = lax.broadcasted_iota(jnp.int32, (Pp, Pp), 0)
    c_idx = lax.broadcasted_iota(jnp.int32, (Pp, Pp), 1)
    cvalid = c_idx < p_valid
    rvalid = r_idx < p_valid
    logits_mask = jnp.where(jnp.logical_and(r_idx != c_idx, cvalid), 1.0, 0.0)
    eqmask = jnp.where(
        jnp.logical_and((r_idx >> 1) == (c_idx >> 1),
                        jnp.logical_and(cvalid, rvalid)), 1.0, 0.0)
    pos_mask = eqmask * logits_mask
    lmax2 = jnp.max(jnp.where(cvalid, adc, neg_inf), axis=1, keepdims=True)
    logits2 = adc - lmax2
    exp_logits = jnp.exp(logits2) * logits_mask
    log_prob = logits2 - jnp.log(
        jnp.sum(exp_logits, axis=1, keepdims=True) + 1e-12)
    mlpp = (jnp.sum(pos_mask * log_prob, axis=1, keepdims=True)
            / (jnp.sum(pos_mask, axis=1, keepdims=True) + 1e-12))
    pvalid_col_f = (lax.broadcasted_iota(jnp.int32, (Pp, 1), 0)
                    < p_valid).astype(jnp.float32)
    contra = -jnp.sum(mlpp * pvalid_col_f) * inv_K

    # Scalar losses -> SMEM.
    loss_ref[0] = mle
    loss_ref[1] = contra


def palm_forward(features, targets, protos, class_known, *, n_views,
                 proto_m=0.99, temp=0.1, lambda_pcon=1.0, epsilon=0.05,
                 sinkhorn_iterations=3):
    """Functional equivalent of PALM.forward.

    Returns (total_loss, loss_dict, new_protos); new_protos is the updated
    (detached) prototype state that PyTorch keeps in self.protos.
    """
    B, V, D = features.shape
    assert V == n_views
    P = protos.shape[0]
    N = V * B

    # Lane-dense padding: P (lane axis of all [N,P] work) to a multiple of
    # 128, N (sublane axis) to a multiple of 8.
    P_pad = _round_up(P, 128)
    N_pad = _round_up(N, 8)

    # --- glue: flatten views (bf16) + per-row prototype-pair index ---
    # torch.cat(torch.unbind(features, dim=1), dim=0): view-major flatten.
    feat = (jnp.transpose(features, (1, 0, 2)).reshape(N, D)
            .astype(jnp.bfloat16))
    # targets.view(-1,1).repeat(1,n_views).view(-1): sample-major repeat.
    targets_rep = jnp.repeat(targets, n_views)                            # [N]
    known = jnp.asarray(sorted(class_known), dtype=targets_rep.dtype)     # [C]
    eq = targets_rep[:, None] == known[None, :]                           # [N,C]
    pair_idx = jnp.where(eq.any(axis=1),
                         jnp.argmax(eq, axis=1).astype(jnp.int32),
                         jnp.int32(-1))                                   # [N]

    feat_p = jnp.pad(feat, ((0, N_pad - N), (0, 0)))
    protos_p = jnp.pad(protos.astype(jnp.float32), ((0, P_pad - P), (0, 0)))
    idx_p = jnp.pad(pair_idx, (0, N_pad - N),
                    constant_values=-1).reshape(N_pad, 1)

    kernel = functools.partial(
        _palm_kernel, n_valid=N, p_valid=P, epsilon=float(epsilon),
        proto_m=float(proto_m), temp=float(temp),
        sinkhorn_iterations=int(sinkhorn_iterations))

    vmem = pl.BlockSpec(memory_space=pltpu.MemorySpace.VMEM)
    smem = pl.BlockSpec(memory_space=pltpu.MemorySpace.SMEM)

    # Generation-aware VMEM limit (v7x has 64 MiB physical; v5e/v6e 128 MiB).
    try:
        vmem_cap = int(pltpu.get_tpu_info().vmem_capacity_bytes)
    except Exception:
        vmem_cap = 128 << 20
    est = (N_pad * D * 2                 # feat bf16
           + 2 * P_pad * D * 4           # protos in/out f32
           + N_pad * 4                   # idx
           + 6 * N_pad * P_pad * 4       # live [N,P] f32 temps (out/qt/...)
           + 2 * P_pad * P_pad * 4)      # proto_contra temps
    vmem_limit = max(32 << 20, min(2 * est, vmem_cap - (16 << 20)))

    new_protos_p, losses = pl.pallas_call(
        kernel,
        out_shape=(jax.ShapeDtypeStruct((P_pad, D), jnp.float32),
                   jax.ShapeDtypeStruct((2,), jnp.float32)),
        in_specs=[vmem, vmem, vmem],
        out_specs=(vmem, smem),
        compiler_params=pltpu.CompilerParams(vmem_limit_bytes=vmem_limit),
    )(feat_p, protos_p, idx_p)

    new_protos = new_protos_p[:P]
    mle = losses[0]
    total = mle
    loss_dict = {"mle": mle}
    if lambda_pcon > 0:
        g_dis = lambda_pcon * losses[1]
        total = total + g_dis
        loss_dict["proto_contra"] = g_dis
    return total, loss_dict, new_protos


if __name__ == "__main__":
    key = jax.random.PRNGKey(0)
    B, V, D = 4, 2, 128            # batch, n_views, feat_dim
    num_classes = 10
    class_known = [0, 1, 2, 3]     # known classes -> 2*4 = 8 prototypes
    P = 2 * len(class_known)

    kf, kp, kt = jax.random.split(key, 3)
    features = jax.random.normal(kf, (B, V, D), dtype=jnp.float32)
    features = features / jnp.linalg.norm(features, axis=-1, keepdims=True)

    # Deterministic synthetic prototypes (the module's __init__ builds them
    # from a dict of per-class original/augmented vectors; same shape here).
    protos = jax.random.normal(kp, (P, D), dtype=jnp.float32)
    protos = protos / jnp.linalg.norm(protos, axis=-1, keepdims=True)

    targets = jax.random.randint(kt, (B,), 0, num_classes, dtype=jnp.int32)

    loss, loss_dict, new_protos = palm_forward(
        features, targets, protos, class_known,
        n_views=V, proto_m=0.99, temp=0.1, lambda_pcon=1.0, epsilon=0.05,
        sinkhorn_iterations=3)

    jax.block_until_ready((loss, loss_dict["mle"], loss_dict["proto_contra"],
                           new_protos))
    print("KERNEL_OK")
</pallas_src>

<mosaic_0001>
module attributes {stable_mosaic.version = 11 : i64} {
  func.func @_palm_kernel(%arg0: memref<8x128xbf16, #tpu.memory_space<vmem>>, %arg1: memref<128x128xf32, #tpu.memory_space<vmem>>, %arg2: memref<8x1xi32, #tpu.memory_space<vmem>>, %arg3: memref<128x128xf32, #tpu.memory_space<vmem>>, %arg4: memref<2xf32, #tpu.memory_space<smem>>) attributes {dimension_semantics = [], scalar_prefetch = 0 : i64, scratch_operands = 0 : i64, tpu.core_type = #tpu.core_type<tc>} {
    %c0 = arith.constant 0 : index
    %c0_0 = arith.constant 0 : index
    %0 = vector.load %arg0[%c0, %c0_0] : memref<8x128xbf16, #tpu.memory_space<vmem>>, vector<8x128xbf16>
    %c0_1 = arith.constant 0 : index
    %c0_2 = arith.constant 0 : index
    %1 = vector.load %arg1[%c0_1, %c0_2] : memref<128x128xf32, #tpu.memory_space<vmem>>, vector<128x128xf32>
    %c0_3 = arith.constant 0 : index
    %c0_4 = arith.constant 0 : index
    %2 = vector.load %arg2[%c0_3, %c0_4] : memref<8x1xi32, #tpu.memory_space<vmem>>, vector<8x1xi32>
    %3 = tpu.iota {dimensions = array<i32: 1>} : vector<1x128xi32>
    %c8_i32 = arith.constant 8 : i32
    %4 = vector.broadcast %c8_i32 : i32 to vector<1x128xi32>
    %5 = arith.cmpi slt, %3, %4 : vector<1x128xi32>
    %6 = tpu.iota {dimensions = array<i32: 0>} : vector<8x1xi32>
    %c8_i32_5 = arith.constant 8 : i32
    %7 = vector.broadcast %c8_i32_5 : i32 to vector<8x1xi32>
    %8 = arith.cmpi slt, %6, %7 : vector<8x1xi32>
    %9 = vector.broadcast %8 : vector<8x1xi1> to vector<8x128xi1>
    %10 = vector.broadcast %5 : vector<1x128xi1> to vector<8x128xi1>
    %11 = arith.andi %9, %10 : vector<8x128xi1>
    %12 = arith.extui %8 : vector<8x1xi1> to vector<8x1xi32>
    %13 = arith.sitofp %12 : vector<8x1xi32> to vector<8x1xf32>
    %c1_i32 = arith.constant 1 : i32
    %14 = vector.broadcast %c1_i32 : i32 to vector<1x128xi32>
    %15 = arith.shrsi %3, %14 : vector<1x128xi32>
    %16 = vector.broadcast %15 : vector<1x128xi32> to vector<8x128xi32>
    %17 = vector.broadcast %2 : vector<8x1xi32> to vector<8x128xi32>
    %18 = arith.cmpi eq, %16, %17 : vector<8x128xi32>
    %19 = arith.truncf %1 : vector<128x128xf32> to vector<128x128xbf16>
    %cst = arith.constant dense<0.000000e+00> : vector<8x128xf32>
    %20 = tpu.matmul %0, %19, %cst {dimension_numbers = #tpu.dot_dimension_numbers<[1], [1], [0], [0], [0, 0, 1, 0], [], []>} : vector<8x128xbf16>, vector<128x128xbf16>, vector<8x128xf32> -> vector<8x128xf32>
    %cst_6 = arith.constant 0xFF800000 : f32
    %21 = vector.broadcast %cst_6 : f32 to vector<8x128xf32>
    %22 = arith.select %11, %20, %21 : vector<8x128xi1>, vector<8x128xf32>
    %23 = vector.shape_cast %22 : vector<8x128xf32> to vector<1x8x128xf32>
    %cst_7 = arith.constant dense<0xFF800000> : vector<1xf32>
    %24 = vector.multi_reduction <maximumf>, %23, %cst_7 [1, 2] : vector<1x8x128xf32> to vector<1xf32>
    %25 = vector.shape_cast %24 : vector<1xf32> to vector<1x1x1xf32>
    %26 = vector.extract %25[0, 0, 0] : f32 from vector<1x1x1xf32>
    %cst_8 = arith.constant 2.000000e+01 : f32
    %27 = arith.mulf %26, %cst_8 : f32
    %cst_9 = arith.constant 8.872000e+01 : f32
    %28 = arith.cmpf ogt, %27, %cst_9 : f32
    %29 = arith.mulf %1, %1 : vector<128x128xf32>
    %cst_10 = arith.constant dense<0.000000e+00> : vector<128xf32>
    %30 = vector.multi_reduction <add>, %29, %cst_10 [1] : vector<128x128xf32> to vector<128xf32>
    %31 = vector.shape_cast %30 : vector<128xf32> to vector<128x1xf32>
    %cst_11 = arith.constant 1.000000e-24 : f32
    %32 = vector.broadcast %cst_11 : f32 to vector<128x1xf32>
    %33 = arith.maximumf %31, %32 : vector<128x1xf32>
    %34 = math.rsqrt %33 : vector<128x1xf32>
    %35 = tpu.transpose %34, [1, 0] : vector<128x1xf32> -> vector<1x128xf32>
    %cst_12 = arith.constant 1.000000e+00 : f32
    %36 = vector.broadcast %cst_12 : f32 to vector<1x128xf32>
    %37 = arith.select %28, %35, %36 : vector<1x128xf32>
    %38 = vector.broadcast %37 : vector<1x128xf32> to vector<8x128xf32>
    %39 = arith.mulf %20, %38 : vector<8x128xf32>
    %40 = vector.broadcast %34 : vector<128x1xf32> to vector<128x128xf32>
    %41 = arith.mulf %1, %40 : vector<128x128xf32>
    %42 = arith.select %28, %41, %1 : vector<128x128xf32>
    %cst_13 = arith.constant 0xFF800000 : f32
    %43 = vector.broadcast %cst_13 : f32 to vector<8x128xf32>
    %44 = arith.select %11, %39, %43 : vector<8x128xi1>, vector<8x128xf32>
    %45 = vector.shape_cast %44 : vector<8x128xf32> to vector<1x8x128xf32>
    %cst_14 = arith.constant dense<0xFF800000> : vector<1xf32>
    %46 = vector.multi_reduction <maximumf>, %45, %cst_14 [1, 2] : vector<1x8x128xf32> to vector<1xf32>
    %47 = vector.shape_cast %46 : vector<1xf32> to vector<1x1x1xf32>
    %48 = vector.extract %47[0, 0, 0] : f32 from vector<1x1x1xf32>
    %49 = vector.broadcast %48 : f32 to vector<8x128xf32>
    %50 = arith.subf %44, %49 : vector<8x128xf32>
    %cst_15 = arith.constant 2.000000e+01 : f32
    %51 = vector.broadcast %cst_15 : f32 to vector<8x128xf32>
    %52 = arith.mulf %50, %51 : vector<8x128xf32>
    %53 = math.exp %52 : vector<8x128xf32>
    %cst_16 = arith.constant dense<0.000000e+00> : vector<128xf32>
    %54 = vector.multi_reduction <add>, %53, %cst_16 [0] : vector<8x128xf32> to vector<128xf32>
    %55 = vector.shape_cast %54 : vector<128xf32> to vector<1x128xf32>
    %cst_17 = arith.constant 9.99999996E-13 : f32
    %56 = vector.broadcast %cst_17 : f32 to vector<1x128xf32>
    %57 = arith.maximumf %55, %56 : vector<1x128xf32>
    %58 = tpu.reciprocal %57 {approx = true} : vector<1x128xf32> -> vector<1x128xf32>
    %cst_18 = arith.constant 1.250000e-01 : f32
    %59 = vector.broadcast %cst_18 : f32 to vector<1x128xf32>
    %60 = arith.mulf %58, %59 : vector<1x128xf32>
    %61 = vector.broadcast %60 : vector<1x128xf32> to vector<8x128xf32>
    %62 = arith.mulf %53, %61 : vector<8x128xf32>
    %cst_19 = arith.constant dense<0.000000e+00> : vector<8xf32>
    %63 = vector.multi_reduction <add>, %62, %cst_19 [1] : vector<8x128xf32> to vector<8xf32>
    %64 = vector.shape_cast %63 : vector<8xf32> to vector<8x1xf32>
    %cst_20 = arith.constant 9.99999996E-13 : f32
    %65 = vector.broadcast %cst_20 : f32 to vector<8x1xf32>
    %66 = arith.maximumf %64, %65 : vector<8x1xf32>
    %67 = tpu.reciprocal %66 {approx = true} : vector<8x1xf32> -> vector<8x1xf32>
    %cst_21 = arith.constant 1.250000e-01 : f32
    %68 = vector.broadcast %cst_21 : f32 to vector<8x1xf32>
    %69 = arith.mulf %67, %68 : vector<8x1xf32>
    %70 = vector.broadcast %69 : vector<8x1xf32> to vector<8x128xf32>
    %71 = arith.mulf %62, %70 : vector<8x128xf32>
    %cst_22 = arith.constant dense<0.000000e+00> : vector<128xf32>
    %72 = vector.multi_reduction <add>, %71, %cst_22 [0] : vector<8x128xf32> to vector<128xf32>
    %73 = vector.shape_cast %72 : vector<128xf32> to vector<1x128xf32>
    %cst_23 = arith.constant 9.99999996E-13 : f32
    %74 = vector.broadcast %cst_23 : f32 to vector<1x128xf32>
    %75 = arith.maximumf %73, %74 : vector<1x128xf32>
    %76 = tpu.reciprocal %75 {approx = true} : vector<1x128xf32> -> vector<1x128xf32>
    %cst_24 = arith.constant 1.250000e-01 : f32
    %77 = vector.broadcast %cst_24 : f32 to vector<1x128xf32>
    %78 = arith.mulf %76, %77 : vector<1x128xf32>
    %79 = vector.broadcast %78 : vector<1x128xf32> to vector<8x128xf32>
    %80 = arith.mulf %71, %79 : vector<8x128xf32>
    %cst_25 = arith.constant dense<0.000000e+00> : vector<8xf32>
    %81 = vector.multi_reduction <add>, %80, %cst_25 [1] : vector<8x128xf32> to vector<8xf32>
    %82 = vector.shape_cast %81 : vector<8xf32> to vector<8x1xf32>
    %cst_26 = arith.constant 9.99999996E-13 : f32
    %83 = vector.broadcast %cst_26 : f32 to vector<8x1xf32>
    %84 = arith.maximumf %82, %83 : vector<8x1xf32>
    %85 = tpu.reciprocal %84 {approx = true} : vector<8x1xf32> -> vector<8x1xf32>
    %cst_27 = arith.constant 1.250000e-01 : f32
    %86 = vector.broadcast %cst_27 : f32 to vector<8x1xf32>
    %87 = arith.mulf %85, %86 : vector<8x1xf32>
    %88 = vector.broadcast %87 : vector<8x1xf32> to vector<8x128xf32>
    %89 = arith.mulf %80, %88 : vector<8x128xf32>
    %cst_28 = arith.constant dense<0.000000e+00> : vector<128xf32>
    %90 = vector.multi_reduction <add>, %89, %cst_28 [0] : vector<8x128xf32> to vector<128xf32>
    %91 = vector.shape_cast %90 : vector<128xf32> to vector<1x128xf32>
    %cst_29 = arith.constant 9.99999996E-13 : f32
    %92 = vector.broadcast %cst_29 : f32 to vector<1x128xf32>
    %93 = arith.maximumf %91, %92 : vector<1x128xf32>
    %94 = tpu.reciprocal %93 {approx = true} : vector<1x128xf32> -> vector<1x128xf32>
    %cst_30 = arith.constant 1.250000e-01 : f32
    %95 = vector.broadcast %cst_30 : f32 to vector<1x128xf32>
    %96 = arith.mulf %94, %95 : vector<1x128xf32>
    %97 = vector.broadcast %96 : vector<1x128xf32> to vector<8x128xf32>
    %98 = arith.mulf %89, %97 : vector<8x128xf32>
    %cst_31 = arith.constant dense<0.000000e+00> : vector<8xf32>
    %99 = vector.multi_reduction <add>, %98, %cst_31 [1] : vector<8x128xf32> to vector<8xf32>
    %100 = vector.shape_cast %99 : vector<8xf32> to vector<8x1xf32>
    %cst_32 = arith.constant 9.99999996E-13 : f32
    %101 = vector.broadcast %cst_32 : f32 to vector<8x1xf32>
    %102 = arith.maximumf %100, %101 : vector<8x1xf32>
    %103 = tpu.reciprocal %102 {approx = true} : vector<8x1xf32> -> vector<8x1xf32>
    %cst_33 = arith.constant 1.250000e-01 : f32
    %104 = vector.broadcast %cst_33 : f32 to vector<8x1xf32>
    %105 = arith.mulf %103, %104 : vector<8x1xf32>
    %106 = vector.broadcast %105 : vector<8x1xf32> to vector<8x128xf32>
    %107 = arith.mulf %98, %106 : vector<8x128xf32>
    %cst_34 = arith.constant 0.000000e+00 : f32
    %108 = vector.broadcast %cst_34 : f32 to vector<8x128xf32>
    %109 = arith.select %18, %107, %108 : vector<8x128xi1>, vector<8x128xf32>
    %110 = arith.truncf %109 : vector<8x128xf32> to vector<8x128xbf16>
    %cst_35 = arith.constant dense<0.000000e+00> : vector<128x128xf32>
    %111 = tpu.matmul %110, %0, %cst_35 {dimension_numbers = #tpu.dot_dimension_numbers<[0], [0], [1], [1], [0, 1, 1, 1], [], []>} : vector<8x128xbf16>, vector<8x128xbf16>, vector<128x128xf32> -> vector<128x128xf32>
    %cst_36 = arith.constant 9.900000e-01 : f32
    %112 = vector.broadcast %cst_36 : f32 to vector<128x128xf32>
    %113 = arith.mulf %112, %42 : vector<128x128xf32>
    %cst_37 = arith.constant 8.000000e-02 : f32
    %114 = vector.broadcast %cst_37 : f32 to vector<128x128xf32>
    %115 = arith.mulf %114, %111 : vector<128x128xf32>
    %116 = arith.addf %113, %115 : vector<128x128xf32>
    %117 = arith.mulf %116, %116 : vector<128x128xf32>
    %cst_38 = arith.constant dense<0.000000e+00> : vector<128xf32>
    %118 = vector.multi_reduction <add>, %117, %cst_38 [1] : vector<128x128xf32> to vector<128xf32>
    %119 = vector.shape_cast %118 : vector<128xf32> to vector<128x1xf32>
    %cst_39 = arith.constant 1.000000e-24 : f32
    %120 = vector.broadcast %cst_39 : f32 to vector<128x1xf32>
    %121 = arith.maximumf %119, %120 : vector<128x1xf32>
    %122 = math.rsqrt %121 : vector<128x1xf32>
    %123 = vector.broadcast %122 : vector<128x1xf32> to vector<128x128xf32>
    %124 = arith.mulf %116, %123 : vector<128x128xf32>
    %c0_40 = arith.constant 0 : index
    %c0_41 = arith.constant 0 : index
    %125 = vector.load %arg3[%c0_40, %c0_41] : memref<128x128xf32, #tpu.memory_space<vmem>>, vector<128x128xf32>
    tpu.vector_store %arg3[%c0_40, %c0_41], %124 {strides = array<i32>} : memref<128x128xf32, #tpu.memory_space<vmem>>, vector<128x128xf32>,
    %126 = arith.truncf %124 : vector<128x128xf32> to vector<128x128xbf16>
    %cst_42 = arith.constant dense<0.000000e+00> : vector<8x128xf32>
    %127 = tpu.matmul %0, %126, %cst_42 {dimension_numbers = #tpu.dot_dimension_numbers<[1], [1], [0], [0], [0, 0, 1, 0], [], []>} : vector<8x128xbf16>, vector<128x128xbf16>, vector<8x128xf32> -> vector<8x128xf32>
    %cst_43 = arith.constant 1.000000e+01 : f32
    %128 = vector.broadcast %cst_43 : f32 to vector<8x128xf32>
    %129 = arith.mulf %127, %128 : vector<8x128xf32>
    %cst_44 = arith.constant 0xFF800000 : f32
    %130 = vector.shape_cast %5 : vector<1x128xi1> to vector<1x128xi1>
    %131 = vector.broadcast %130 : vector<1x128xi1> to vector<8x128xi1>
    %132 = vector.broadcast %cst_44 : f32 to vector<8x128xf32>
    %133 = arith.select %131, %129, %132 : vector<8x128xi1>, vector<8x128xf32>
    %cst_45 = arith.constant dense<0xFF800000> : vector<8xf32>
    %134 = vector.multi_reduction <maximumf>, %133, %cst_45 [1] : vector<8x128xf32> to vector<8xf32>
    %135 = vector.shape_cast %134 : vector<8xf32> to vector<8x1xf32>
    %136 = vector.broadcast %135 : vector<8x1xf32> to vector<8x128xf32>
    %137 = arith.subf %133, %136 : vector<8x128xf32>
    %138 = math.exp %137 : vector<8x128xf32>
    %cst_46 = arith.constant 0.000000e+00 : f32
    %139 = vector.broadcast %cst_46 : f32 to vector<8x128xf32>
    %140 = arith.select %18, %138, %139 : vector<8x128xi1>, vector<8x128xf32>
    %cst_47 = arith.constant dense<0.000000e+00> : vector<8xf32>
    %141 = vector.multi_reduction <add>, %140, %cst_47 [1] : vector<8x128xf32> to vector<8xf32>
    %142 = vector.shape_cast %141 : vector<8xf32> to vector<8x1xf32>
    %cst_48 = arith.constant 9.99999996E-13 : f32
    %143 = vector.broadcast %cst_48 : f32 to vector<8x1xf32>
    %144 = arith.addf %142, %143 : vector<8x1xf32>
    %cst_49 = arith.constant dense<0.000000e+00> : vector<8xf32>
    %145 = vector.multi_reduction <add>, %138, %cst_49 [1] : vector<8x128xf32> to vector<8xf32>
    %146 = vector.shape_cast %145 : vector<8xf32> to vector<8x1xf32>
    %cst_50 = arith.constant 9.99999996E-13 : f32
    %147 = vector.broadcast %cst_50 : f32 to vector<8x1xf32>
    %148 = arith.addf %146, %147 : vector<8x1xf32>
    %149 = math.log %148 : vector<8x1xf32>
    %150 = math.log %144 : vector<8x1xf32>
    %151 = arith.subf %149, %150 : vector<8x1xf32>
    %152 = arith.mulf %151, %13 : vector<8x1xf32>
    %153 = vector.shape_cast %152 : vector<8x1xf32> to vector<1x8x1xf32>
    %cst_51 = arith.constant dense<0.000000e+00> : vector<1xf32>
    %154 = vector.multi_reduction <add>, %153, %cst_51 [1, 2] : vector<1x8x1xf32> to vector<1xf32>
    %155 = vector.shape_cast %154 : vector<1xf32> to vector<1x1x1xf32>
    %156 = vector.extract %155[0, 0, 0] : f32 from vector<1x1x1xf32>
    %cst_52 = arith.constant 1.250000e-01 : f32
    %157 = arith.mulf %156, %cst_52 : f32
    %cst_53 = arith.constant dense<0.000000e+00> : vector<128x128xf32>
    %158 = tpu.matmul %126, %126, %cst_53 {dimension_numbers = #tpu.dot_dimension_numbers<[1], [1], [0], [0], [0, 0, 1, 0], [], []>} : vector<128x128xbf16>, vector<128x128xbf16>, vector<128x128xf32> -> vector<128x128xf32>
    %cst_54 = arith.constant 2.000000e+00 : f32
    %159 = vector.broadcast %cst_54 : f32 to vector<128x128xf32>
    %160 = arith.mulf %158, %159 : vector<128x128xf32>
    %161 = tpu.iota {dimensions = array<i32: 0>} : vector<128x128xi32>
    %162 = tpu.iota {dimensions = array<i32: 1>} : vector<128x128xi32>
    %c8_i32_55 = arith.constant 8 : i32
    %163 = vector.broadcast %c8_i32_55 : i32 to vector<128x128xi32>
    %164 = arith.cmpi slt, %162, %163 : vector<128x128xi32>
    %c8_i32_56 = arith.constant 8 : i32
    %165 = vector.broadcast %c8_i32_56 : i32 to vector<128x128xi32>
    %166 = arith.cmpi slt, %161, %165 : vector<128x128xi32>
    %167 = arith.cmpi ne, %161, %162 : vector<128x128xi32>
    %168 = arith.andi %167, %164 : vector<128x128xi1>
    %cst_57 = arith.constant 1.000000e+00 : f32
    %cst_58 = arith.constant 0.000000e+00 : f32
    %169 = vector.broadcast %cst_57 : f32 to vector<128x128xf32>
    %170 = vector.broadcast %cst_58 : f32 to vector<128x128xf32>
    %171 = arith.select %168, %169, %170 : vector<128x128xi1>, vector<128x128xf32>
    %c1_i32_59 = arith.constant 1 : i32
    %172 = vector.broadcast %c1_i32_59 : i32 to vector<128x128xi32>
    %173 = arith.shrsi %161, %172 : vector<128x128xi32>
    %c1_i32_60 = arith.constant 1 : i32
    %174 = vector.broadcast %c1_i32_60 : i32 to vector<128x128xi32>
    %175 = arith.shrsi %162, %174 : vector<128x128xi32>
    %176 = arith.cmpi eq, %173, %175 : vector<128x128xi32>
    %177 = arith.andi %164, %166 : vector<128x128xi1>
    %178 = arith.andi %176, %177 : vector<128x128xi1>
    %cst_61 = arith.constant 1.000000e+00 : f32
    %cst_62 = arith.constant 0.000000e+00 : f32
    %179 = vector.broadcast %cst_61 : f32 to vector<128x128xf32>
    %180 = vector.broadcast %cst_62 : f32 to vector<128x128xf32>
    %181 = arith.select %178, %179, %180 : vector<128x128xi1>, vector<128x128xf32>
    %182 = arith.mulf %181, %171 : vector<128x128xf32>
    %cst_63 = arith.constant 0xFF800000 : f32
    %183 = vector.broadcast %cst_63 : f32 to vector<128x128xf32>
    %184 = arith.select %164, %160, %183 : vector<128x128xi1>, vector<128x128xf32>
    %cst_64 = arith.constant dense<0xFF800000> : vector<128xf32>
    %185 = vector.multi_reduction <maximumf>, %184, %cst_64 [1] : vector<128x128xf32> to vector<128xf32>
    %186 = vector.shape_cast %185 : vector<128xf32> to vector<128x1xf32>
    %187 = vector.broadcast %186 : vector<128x1xf32> to vector<128x128xf32>
    %188 = arith.subf %160, %187 : vector<128x128xf32>
    %189 = math.exp %188 : vector<128x128xf32>
    %190 = arith.mulf %189, %171 : vector<128x128xf32>
    %cst_65 = arith.constant dense<0.000000e+00> : vector<128xf32>
    %191 = vector.multi_reduction <add>, %190, %cst_65 [1] : vector<128x128xf32> to vector<128xf32>
    %192 = vector.shape_cast %191 : vector<128xf32> to vector<128x1xf32>
    %cst_66 = arith.constant 9.99999996E-13 : f32
    %193 = vector.broadcast %cst_66 : f32 to vector<128x1xf32>
    %194 = arith.addf %192, %193 : vector<128x1xf32>
    %195 = math.log %194 : vector<128x1xf32>
    %196 = vector.broadcast %195 : vector<128x1xf32> to vector<128x128xf32>
    %197 = arith.subf %188, %196 : vector<128x128xf32>
    %198 = arith.mulf %182, %197 : vector<128x128xf32>
    %cst_67 = arith.constant dense<0.000000e+00> : vector<128xf32>
    %199 = vector.multi_reduction <add>, %198, %cst_67 [1] : vector<128x128xf32> to vector<128xf32>
    %200 = vector.shape_cast %199 : vector<128xf32> to vector<128x1xf32>
    %cst_68 = arith.constant dense<0.000000e+00> : vector<128xf32>
    %201 = vector.multi_reduction <add>, %182, %cst_68 [1] : vector<128x128xf32> to vector<128xf32>
    %202 = vector.shape_cast %201 : vector<128xf32> to vector<128x1xf32>
    %cst_69 = arith.constant 9.99999996E-13 : f32
    %203 = vector.broadcast %cst_69 : f32 to vector<128x1xf32>
    %204 = arith.addf %202, %203 : vector<128x1xf32>
    %205 = arith.divf %200, %204 : vector<128x1xf32>
    %206 = tpu.iota {dimensions = array<i32: 0>} : vector<128x1xi32>
    %c8_i32_70 = arith.constant 8 : i32
    %207 = vector.broadcast %c8_i32_70 : i32 to vector<128x1xi32>
    %208 = arith.cmpi slt, %206, %207 : vector<128x1xi32>
    %209 = arith.extui %208 : vector<128x1xi1> to vector<128x1xi32>
    %210 = arith.sitofp %209 : vector<128x1xi32> to vector<128x1xf32>
    %211 = arith.mulf %205, %210 : vector<128x1xf32>
    %212 = vector.shape_cast %211 : vector<128x1xf32> to vector<1x128x1xf32>
    %cst_71 = arith.constant dense<0.000000e+00> : vector<1xf32>
    %213 = vector.multi_reduction <add>, %212, %cst_71 [1, 2] : vector<1x128x1xf32> to vector<1xf32>
    %214 = vector.shape_cast %213 : vector<1xf32> to vector<1x1x1xf32>
    %215 = vector.extract %214[0, 0, 0] : f32 from vector<1x1x1xf32>
    %cst_72 = arith.constant 0.000000e+00 : f32
    %216 = arith.subf %cst_72, %215 : f32
    %cst_73 = arith.constant 1.250000e-01 : f32
    %217 = arith.mulf %216, %cst_73 : f32
    %c0_74 = arith.constant 0 : index
    %218 = memref.load %arg4[%c0_74] : memref<2xf32, #tpu.memory_space<smem>>
    memref.store %157, %arg4[%c0_74] : memref<2xf32, #tpu.memory_space<smem>>
    %c1 = arith.constant 1 : index
    %219 = memref.load %arg4[%c1] : memref<2xf32, #tpu.memory_space<smem>>
    memref.store %217, %arg4[%c1] : memref<2xf32, #tpu.memory_space<smem>>
    return
  }
}

</mosaic_0001>

<bundles_post_ra>
// kernel: tpu_custom_call.1
= control target key start
LH: loop header
LB: loop body
LE: loop exit
PB: predicated region body
PF: predicated region fallthrough
CT: control target
= control target key end

     0   :  { %10 = vsyncpa [#allocation3], 0  ;;  %s2697_s0 = inlined_call_operand.vmem [shape: bf16[8,128], index: 0, kind: input, shape index: {}]   ;;  %s2698_s1 = inlined_call_operand.hbm [shape: f32[128,128], index: 1, kind: input, shape index: {}]   ;;  %s2699_s2 = inlined_call_operand.vmem [shape: s32[8,1], index: 2, kind: input, shape index: {}]   ;;  %s2700_s3 = inlined_call_operand.hbm [shape: f32[128,128], index: 3, kind: output, shape index: {0}]   ;;  %s2701_s4 = inlined_call_operand.hbm [shape: f32[2], index: 4, kind: output, shape index: {1}]  }
   0x1   :  { %11 = vsyncpa [#allocation4], 0 }
   0x2   :  { %12 = vsyncpa [#allocation5], 0  ;;  %s1866_s15 = smov [#allocation2]  }
   0x3   :  { %s20_s16 = sshll.u32 %s1866_s15, 4  ;;  %s21_s16 = int_to_ptr.vmem [resolvable:$true] %s20_s16 }
   0x4   :  { %s1820_s17 = scalar_lea.vmem %s21_s16, 2048  ;;  %p1825_p1 = scmp.lt.s32.totalorder %s21_s16, %s21_s16 }
   0x5   :  { %p1821_p0 = scmp.ne.s32.totalorder %s21_s16, %s1820_s17  ;;  %p1826_p2 = scmp.lt.s32.totalorder %s1820_s17, %s1820_s17 }
   0x7   :  { %p1827_p3 = por %p1826_p2, %p1825_p1 }
   0x9   :  { %p1828_p4 = pnand %p1827_p3, %p1821_p0 }
   0xb   :  { %1831 = shalt.err (!%p1828_p4)
}
   0xc   :  { %s1867_s18 = smov 128   ;;  %s1868_s19 = smov 8  }
   0xd   :  { %26 = dma.hbm_to_vmem [thread:$0]  %s2698_s1, 2048, %s21_s16, [#allocation3], %s1867_s18, %s1867_s18, %s1868_s19  }
   0xe   :  { %1860 = dma.done.wait [#allocation3], 2048  }
   0xf   :  { %1861 = vsyncadd [#allocation3], 4294965248  ;;  %v1869_v0 = vmov 0.0   ;;  %vm1870_vm0 = vmmov 0   ;;  %v1908_v1 = vld [vmem:[#allocation2 + $0x70] sm:$0xff]  ;;  %v1910_v2 = vld [vmem:[#allocation2 + $0x78] sm:$0xff]  ;;  %v51_v42 = vlaneseq }
  0x10   :  { %1524 = vmatprep.subr.bf16.mxu1 %v1869_v0  ;;  %1540 = vmatprep.mubr.msk.bf16.mxu1 %vm1870_vm0, %v1869_v0  ;;  %v75_v3 = vpack.c.bf16 %v1910_v2, %v1908_v1  ;;  %v1914_v4 = vld [vmem:[#allocation2 + $0x60] sm:$0xff]  ;;  %v1917_v5 = vld [vmem:[#allocation2 + $0x68] sm:$0xff]  ;;  %v1919_v6 = vld [vmem:[#allocation2 + $0x10] sm:$0xff]  ;;  %v142_v34 = vmul.f32 %v1908_v1, %v1908_v1  ;;  %v143_v37 = vmul.f32 %v1910_v2, %v1910_v2  ;;  %vm387_vm3 = vcmask 1043456  }
  0x11   :  { %v1921_v7 = vld [vmem:[#allocation2] sm:$0xff]  ;;  %v130_v9 = vmul.f32 %v1919_v6, %v1919_v6  ;;  %v1927_v10 = vld [vmem:[#allocation2 + $0x8] sm:$0xff]  ;;  %v74_v11 = vpack.c.bf16 %v1917_v5, %v1914_v4  ;;  %v1931_v12 = vld [vmem:[#allocation2 + $0x18] sm:$0xff]  ;;  %v140_v32 = vmul.f32 %v1914_v4, %v1914_v4  ;;  %v141_v36 = vmul.f32 %v1917_v5, %v1917_v5 }
  0x12   :  { %1525 = vmatpush3.bf16.xpose.msra.mxu1 %v75_v3  ;;  %v128_v8 = vmul.f32 %v1921_v7, %v1921_v7  ;;  %v129_v13 = vmul.f32 %v1927_v10, %v1927_v10  ;;  %v131_v14 = vmul.f32 %v1931_v12, %v1931_v12  ;;  %v1937_v15 = vld [vmem:[#allocation2 + $0x20] sm:$0xff]  ;;  %v1939_v16 = vld [vmem:[#allocation2 + $0x30] sm:$0xff]  ;;  %v1946_v19 = vld [vmem:[#allocation2 + $0x58] sm:$0xff]  ;;  %v69_v39 = vpack.c.bf16 %v1931_v12, %v1919_v6 }
  0x13   :  { %1526 = vmatprep.subr.bf16.mxu1 %v1869_v0  ;;  %148 = vadd.xlane.f32.xlu1 %v130_v9  ;;  %v132_v17 = vmul.f32 %v1937_v15, %v1937_v15  ;;  %v1944_v18 = vld [vmem:[#allocation2 + $0x50] sm:$0xff]  ;;  %v134_v20 = vmul.f32 %v1939_v16, %v1939_v16  ;;  %v1950_v21 = vld [vmem:[#allocation2 + $0x28] sm:$0xff]  ;;  %v1954_v23 = vld [vmem:[#allocation2 + $0x40] sm:$0xff]  ;;  %v139_v33 = vmul.f32 %v1946_v19, %v1946_v19  ;;  %v2005_v43 = vand.u32 127, %v51_v42 }
  0x14   :  { %144 = vadd.xlane.f32.xlu0 %v128_v8  ;;  %v73_v22 = vpack.c.bf16 %v1946_v19, %v1944_v18  ;;  %v133_v24 = vmul.f32 %v1950_v21, %v1950_v21  ;;  %v136_v25 = vmul.f32 %v1954_v23, %v1954_v23  ;;  %v1960_v26 = vld [vmem:[#allocation2 + $0x38] sm:$0xff]  ;;  %v1965_v28 = vld [vmem:[#allocation2 + $0x48] sm:$0xff]  ;;  %v138_v29 = vmul.f32 %v1944_v18, %v1944_v18  ;;  %v1999_v41 = vld [vmem:[%s2697_s0] sm:$0xf] }
  0x15   :  { %v135_v27 = vmul.f32 %v1960_v26, %v1960_v26  ;;  %v72_v30 = vpack.c.bf16 %v1965_v28, %v1954_v23  ;;  %v137_v31 = vmul.f32 %v1965_v28, %v1965_v28  ;;  %v71_v35 = vpack.c.bf16 %v1960_v26, %v1939_v16  ;;  %1614 = vmatprep.subr.msk.bf16.mxu0 %vm387_vm3, %v1999_v41 }
  0x16   :  { %v70_v38 = vpack.c.bf16 %v1950_v21, %v1937_v15  ;;  %v68_v40 = vpack.c.bf16 %v1927_v10, %v1921_v7  ;;  %vm53_vm1 = vcmp.lt.s32.totalorder %v2005_v43, 8  ;;  %vm362_vm5 = vcmask 64512  }
  0x17   :  { %150 = vadd.xlane.f32.xlu1 %v131_v14 }
  0x18   :  { %146 = vadd.xlane.f32.xlu0 %v129_v13 }
  0x1a   :  { %1527 = vmatpush3.bf16.xpose.msra.mxu1 %v74_v11 }
  0x1b   :  { %1528 = vmatprep.subr.bf16.mxu1 %v1869_v0  ;;  %156 = vadd.xlane.f32.xlu1 %v134_v20 }
  0x1c   :  { %152 = vadd.xlane.f32.xlu0 %v132_v17 }
  0x1f   :  { %160 = vadd.xlane.f32.xlu1 %v136_v25 }
  0x20   :  { %154 = vadd.xlane.f32.xlu0 %v133_v24 }
  0x22   :  { %1529 = vmatpush3.bf16.xpose.msra.mxu1 %v73_v22 }
  0x23   :  { %1530 = vmatprep.subr.bf16.mxu1 %v1869_v0  ;;  %164 = vadd.xlane.f32.xlu1 %v138_v29 }
  0x24   :  { %158 = vadd.xlane.f32.xlu0 %v135_v27 }
  0x27   :  { %168 = vadd.xlane.f32.xlu1 %v140_v32 }
  0x28   :  { %162 = vadd.xlane.f32.xlu0 %v137_v31 }
  0x2a   :  { %1531 = vmatpush3.bf16.xpose.msra.mxu1 %v72_v30 }
  0x2b   :  { %1532 = vmatprep.subr.bf16.mxu1 %v1869_v0  ;;  %172 = vadd.xlane.f32.xlu1 %v142_v34 }
  0x2c   :  { %166 = vadd.xlane.f32.xlu0 %v139_v33 }
  0x30   :  { %170 = vadd.xlane.f32.xlu0 %v141_v36 }
  0x32   :  { %1533 = vmatpush3.bf16.xpose.msra.mxu1 %v71_v35 }
  0x33   :  { %1534 = vmatprep.subr.bf16.mxu1 %v1869_v0 }
  0x34   :  { %174 = vadd.xlane.f32.xlu0 %v143_v37 }
  0x3a   :  { %1535 = vmatpush3.bf16.xpose.msra.mxu1 %v70_v38 }
  0x3b   :  { %1536 = vmatprep.subr.bf16.mxu1 %v1869_v0 }
  0x42   :  { %1537 = vmatpush3.bf16.xpose.msra.mxu1 %v69_v39 }
  0x43   :  { %1538 = vmatprep.subr.bf16.mxu1 %v1869_v0 }
  0x4a   :  { %1539 = vmatpush3.bf16.xpose.msra.mxu1 %v68_v40 }
  0x4b   :  { %1562 = vmatprep.subr.bf16.mxu1 %v1869_v0 }
  0x51   :  { %1541 = vmatmul.mubr.bf16.vlgmr.msra.gmra.mxu1 %v1999_v41 }
  0x52   :  { %1578 = vmatprep.mubr.msk.bf16.mxu1 %vm1870_vm0, %v1869_v0 }
  0x9c   :  { %v149_v52 = vpop.xlane.xlu1 %148 }
  0x9d   :  { %v145_v49 = vpop.xlane.xlu0 %144  ;;  %v178_v54 = vmax.f32 %v149_v52, 1e-24 }
  0x9e   :  { %v176_v50 = vmax.f32 %v145_v49, 1e-24 }
  0xa0   :  { %1632 = vrsqrt.f32 %v176_v50  ;;  %v151_v55 = vpop.xlane.xlu1 %150 }
  0xa1   :  { %v147_v51 = vpop.xlane.xlu0 %146  ;;  %v179_v57 = vmax.f32 %v151_v55, 1e-24 }
  0xa2   :  { %v177_v53 = vmax.f32 %v147_v51, 1e-24 }
  0xa4   :  { %1634 = vrsqrt.f32 %v177_v53  ;;  %v157_v63 = vpop.xlane.xlu1 %156 }
  0xa5   :  { %v153_v56 = vpop.xlane.xlu0 %152  ;;  %1636 = vrsqrt.f32 %v178_v54  ;;  %v182_v3 = vmax.f32 %v157_v63, 1e-24  ;;  %v2062_v63 = vshrl.u32 %v51_v42, 7 }
  0xa6   :  { %1638 = vrsqrt.f32 %v179_v57  ;;  %v180_v58 = vmax.f32 %v153_v56, 1e-24 }
  0xa7   :  { %vm871_vm6 = vcmp.ne.s32.totalorder %v2062_v63, %v2005_v43 }
  0xa8   :  { %1640 = vrsqrt.f32 %v180_v58  ;;  %v161_v14 = vpop.xlane.xlu1 %160  ;;  %vm887_vm7 = vmand %vm871_vm6, %vm53_vm1 }
  0xa9   :  { %v155_v60 = vpop.xlane.xlu0 %154  ;;  %v184_v17 = vmax.f32 %v161_v14, 1e-24 }
  0xaa   :  { %v181_v61 = vmax.f32 %v155_v60, 1e-24 }
  0xac   :  { %1642 = vrsqrt.f32 %v181_v61  ;;  %v165_v27 = vpop.xlane.xlu1 %164 }
  0xad   :  { %v2013_v59 = vpop.eup %1632  ;;  %v159_v9 = vpop.xlane.xlu0 %158  ;;  %1644 = vrsqrt.f32 %v182_v3  ;;  %v186_v29 = vmax.f32 %v165_v27, 1e-24  ;;  %v246_v3 = vsub.s32 0, %v2062_v63 }
  0xae   :  { %v183_v11 = vmax.f32 %v159_v9, 1e-24 }
  0xb0   :  { %1646 = vrsqrt.f32 %v183_v11  ;;  %v169_v34 = vpop.xlane.xlu1 %168 }
  0xb1   :  { %v2016_v62 = vpop.eup %1634  ;;  %v163_v22 = vpop.xlane.xlu0 %162  ;;  %1648 = vrsqrt.f32 %v184_v17  ;;  %v188_v35 = vmax.f32 %v169_v34, 1e-24 }
  0xb2   :  { %v2019_v8 = vpop.eup %1636  ;;  %v185_v24 = vmax.f32 %v163_v22, 1e-24 }
  0xb3   :  { %v2022_v13 = vpop.eup %1638 }
  0xb4   :  { %1650 = vrsqrt.f32 %v185_v24  ;;  %v173_v40 = vpop.xlane.xlu1 %172 }
  0xb5   :  { %v2025_v20 = vpop.eup %1640  ;;  %v167_v31 = vpop.xlane.xlu0 %166  ;;  %1652 = vrsqrt.f32 %v186_v29 }
  0xb6   :  { %v187_v32 = vmax.f32 %v167_v31, 1e-24 }
  0xb8   :  { %1654 = vrsqrt.f32 %v187_v32 }
  0xb9   :  { %v2028_v25 = vpop.eup %1642  ;;  %v171_v37 = vpop.xlane.xlu0 %170  ;;  %1656 = vrsqrt.f32 %v188_v35 }
  0xba   :  { %v2031_v30 = vpop.eup %1644  ;;  %v189_v38 = vmax.f32 %v171_v37, 1e-24 }
  0xbc   :  { %1658 = vrsqrt.f32 %v189_v38 }
  0xbd   :  { %v2034_v33 = vpop.eup %1646 }
  0xbe   :  { %v2037_v36 = vpop.eup %1648 }
  0xc1   :  { %v2040_v39 = vpop.eup %1650 }
 0x111   :  { %v2008_v44 = vpop.f32.mrf.mxu1 }
 0x112   :  { %v116_v45 = vsel %vm53_vm1, %v2008_v44, -inf }
 0x113   :  { %117 = vmax.xlane.f32.xlu1 %v116_v45  ;;  %v1542_v46 = vpop.f32.mrf.mxu1  ;;  %v190_v45 = vmax.f32 %v173_v40, 1e-24 }
 0x114   :  { %v2043_v46 = vpop.eup %1652 }
 0x115   :  { %v113_v47 = vpop.f32.mrf.mxu1  ;;  %1660 = vrsqrt.f32 %v190_v45  ;;  %v2046_v49 = vpop.eup %1654 }
 0x116   :  { %v175_v47 = vpop.xlane.xlu0 %174  ;;  %v2049_v50 = vpop.eup %1656 }
 0x117   :  { %v1543_v48 = vpop.f32.mrf.mxu1  ;;  %v2052_v51 = vpop.eup %1658 }
 0x118   :  { %v191_v48 = vmax.f32 %v175_v47, 1e-24 }
 0x11a   :  { %1662 = vrsqrt.f32 %v191_v48 }
 0x122   :  { %v2055_v52 = vpop.eup %1660 }
 0x127   :  { %v2058_v53 = vpop.eup %1662 }
 0x146   :  { %208 = vxpose.xlu1.b32.start [1/16] (narrow) %v2013_v59, 8 }
 0x14a   :  { %209 = vxpose.xlu1.b32.cont [2/16] (narrow) %v2016_v62, 8 }
 0x14e   :  { %210 = vxpose.xlu1.b32.cont [3/16] (narrow) %v2019_v8, 8 }
 0x152   :  { %211 = vxpose.xlu1.b32.cont [4/16] (narrow) %v2022_v13, 8 }
 0x156   :  { %212 = vxpose.xlu1.b32.cont [5/16] (narrow) %v2025_v20, 8 }
 0x15a   :  { %213 = vxpose.xlu1.b32.cont [6/16] (narrow) %v2028_v25, 8 }
 0x15e   :  { %214 = vxpose.xlu1.b32.cont [7/16] (narrow) %v2031_v30, 8 }
 0x162   :  { %215 = vxpose.xlu1.b32.cont [8/16] (narrow) %v2034_v33, 8 }
 0x166   :  { %216 = vxpose.xlu1.b32.cont [9/16] (narrow) %v2037_v36, 8 }
 0x16a   :  { %217 = vxpose.xlu1.b32.cont [10/16] (narrow) %v2040_v39, 8 }
 0x16e   :  { %218 = vxpose.xlu1.b32.cont [11/16] (narrow) %v2043_v46, 8 }
 0x172   :  { %219 = vxpose.xlu1.b32.cont [12/16] (narrow) %v2046_v49, 8 }
 0x176   :  { %220 = vxpose.xlu1.b32.cont [13/16] (narrow) %v2049_v50, 8 }
 0x17a   :  { %221 = vxpose.xlu1.b32.cont [14/16] (narrow) %v2052_v51, 8 }
 0x17e   :  { %222 = vxpose.xlu1.b32.cont [15/16] (narrow) %v2055_v52, 8 }
 0x182   :  { %223 = vxpose.xlu1.b32.end [16/16] (narrow) %v2058_v53, 8 }
 0x19c   :  { %v118_v54 = vpop.xlane.xlu1 %117 }
 0x19d   :  { %v119_v55 = vrot.slane %v118_v54, 4 }
 0x19f   :  { %v120_v56 = vmax.f32 %v118_v54, %v119_v55 }
 0x1a1   :  { %v121_v57 = vrot.slane %v120_v56, 2 }
 0x1a3   :  { %v122_v58 = vmax.f32 %v120_v56, %v121_v57 }
 0x1a5   :  { %v123_v60 = vrot.slane %v122_v58, 1 }
 0x1a7   :  { %v124_v61 = vmax.f32 %v122_v58, %v123_v60 }
 0x1a9   :  { %1615 = vpush %v124_v61 }
 0x1c2   :  { %v224_v9 = vpop.trf.xlu1 }
 0x1da   :  { %s1616_s0 = spop %1615 }
 0x1db   :  { %s126_s23 = smul.f32 20.0, %s1616_s0 }
 0x1dd   :  { %p127_p5 = scmp.gt.f32.partialorder %s126_s23, 88.72 }
 0x1df   :  { %s240_s24 = scalar_select %p127_p5, 1, 0 }
 0x1e1   :  { %v2065_v11 = vstv %s240_s24 }
 0x1e2   :  { %vm242_vm2 = vcmp.eq.s32.totalorder %v2065_v11, 1 }
 0x1e3   :  { %v243_v14 = vsel %vm242_vm2, %v224_v9, 1.0 }
 0x1e4   :  { %v247_v17 = vrot.slane %v243_v14, %v246_v3 }
 0x1e6   :  { %v248_v22 = vmul.f32 %v247_v17, %v2008_v44 }
 0x1e8   :  { %v281_v24 = vsel %vm53_vm1, %v248_v22, -inf }
 0x1e9   :  { %282 = vmax.xlane.f32.xlu0 %v281_v24 }
 0x272   :  { %v283_v42 = vpop.xlane.xlu0 %282 }
 0x273   :  { %v284_v27 = vrot.slane %v283_v42, 4 }
 0x275   :  { %v285_v29 = vmax.f32 %v283_v42, %v284_v27 }
 0x277   :  { %v286_v31 = vrot.slane %v285_v29, 2 }
 0x279   :  { %v287_v32 = vmax.f32 %v285_v29, %v286_v31 }
 0x27b   :  { %v288_v34 = vrot.slane %v287_v32, 1 }
 0x27d   :  { %v289_v35 = vmax.f32 %v287_v32, %v288_v34 }
 0x27f   :  { %1617 = vpush %v289_v35 }
 0x2b0   :  { %s1618_s25 = spop %1617 }
 0x2b1   :  { %v291_v37 = vstv %s1618_s25 }
 0x2b2   :  { %v292_v38 = vsub.f32 %v281_v24, %v291_v37 }
 0x2b4   :  { %v293_v40 = vmul.f32 20.0, %v292_v38 }
 0x2b6   :  { %v294_v45 = vmul.f32 1.442695, %v293_v40 }
 0x2b8   :  { %1664 = vpow2.f32 %v294_v45  ;;  %v1871_v45 = vmov 0  }
 0x2b9   :  { %1631 = vset.pattern.permute.xlu0 %v1871_v45 }
 0x2c5   :  { %v1665_v47 = vpop.eup %1664 }
 0x2c6   :  { %v296_v44 = vrot.slane %v1665_v47, 4 }
 0x2c8   :  { %v297_v48 = vadd.f32 %v1665_v47, %v296_v44 }
 0x2ca   :  { %v298_v54 = vrot.slane %v297_v48, 2 }
 0x2cc   :  { %v299_v55 = vadd.f32 %v298_v54, %v297_v48 }
 0x2ce   :  { %v300_v56 = vrot.slane %v299_v55, 1 }
 0x2d0   :  { %v301_v57 = vadd.f32 %v300_v56, %v299_v55 }
 0x2d2   :  { %v302_v58 = vmax.f32 %v301_v57, 1e-12 }
 0x2d4   :  { %1666 = vrcp.f32 %v302_v58 }
 0x2e1   :  { %v1667_v60 = vpop.eup %1666 }
 0x2e2   :  { %v304_v61 = vmul.f32 0.125, %v1667_v60 }
 0x2e4   :  { %v305_v3 = vmul.f32 %v1665_v47, %v304_v61 }
 0x2e6   :  { %306 = vadd.xlane.f32.xlu0 %v305_v3 }
 0x36f   :  { %v307_v9 = vpop.xlane.xlu0 %306 }
 0x370   :  { %v308_v14 = vmax.f32 %v307_v9, 1e-12 }
 0x372   :  { %1668 = vrcp.f32 %v308_v14 }
 0x37f   :  { %v1669_v17 = vpop.eup %1668 }
 0x380   :  { %v310_v22 = vmul.f32 0.125, %v1669_v17 }
 0x382   :  { %v311_v24 = vmul.f32 %v310_v22, %v305_v3 }
 0x384   :  { %v312_v42 = vrot.slane %v311_v24, 4 }
 0x386   :  { %v313_v27 = vadd.f32 %v312_v42, %v311_v24  ;;  %v389_v42 = vsel %vm387_vm3, %v1999_v41, 0 }
 0x387   :  { %1545 = vmatpush3.bf16.msra.mxu0 %v389_v42 }
 0x388   :  { %v314_v29 = vrot.slane %v313_v27, 2 }
 0x38a   :  { %v315_v31 = vadd.f32 %v314_v29, %v313_v27 }
 0x38c   :  { %v316_v32 = vrot.slane %v315_v31, 1 }
 0x38e   :  { %v317_v34 = vadd.f32 %v316_v32, %v315_v31  ;;  %v63_v31 = vshra.s32 %v2005_v43, 1 }
 0x390   :  { %v318_v35 = vmax.f32 %v317_v34, 1e-12 }
 0x392   :  { %1670 = vrcp.f32 %v318_v35 }
 0x39f   :  { %v1671_v37 = vpop.eup %1670 }
 0x3a0   :  { %v320_v38 = vmul.f32 0.125, %v1671_v37 }
 0x3a2   :  { %v321_v40 = vmul.f32 %v320_v38, %v311_v24  ;;  %v50_v24 = vld [vmem:[%s2699_s2] sm:$0xff]  ;;  %s1872_s2 = smov [#allocation6]  }
 0x3a3   :  { %s1448_s28 = sshll.u32 %s1872_s2, 4  ;;  %s1449_s28 = int_to_ptr.vmem [resolvable:$true] %s1448_s28 }
 0x3a4   :  { %322 = vadd.xlane.f32.xlu0 %v321_v40  ;;  %s1832_s29 = scalar_lea.vmem %s1449_s28, 2048  ;;  %p1837_p7 = scmp.lt.s32.totalorder %s1449_s28, %s1449_s28 }
 0x3a5   :  { %p1833_p6 = scmp.ne.s32.totalorder %s1449_s28, %s1832_s29  ;;  %p1838_p8 = scmp.lt.s32.totalorder %s1832_s29, %s1832_s29 }
 0x3a7   :  { %p1839_p9 = por %p1838_p8, %p1837_p7 }
 0x3a9   :  { %p1840_p10 = pnand %p1839_p9, %p1833_p6 }
 0x42d   :  { %v323_v47 = vpop.xlane.xlu0 %322 }
 0x42e   :  { %v324_v44 = vmax.f32 %v323_v47, 1e-12 }
 0x430   :  { %1672 = vrcp.f32 %v324_v44 }
 0x43d   :  { %v1673_v48 = vpop.eup %1672 }
 0x43e   :  { %v326_v54 = vmul.f32 0.125, %v1673_v48 }
 0x440   :  { %v327_v55 = vmul.f32 %v326_v54, %v321_v40 }
 0x442   :  { %v328_v56 = vrot.slane %v327_v55, 4 }
 0x444   :  { %v329_v57 = vadd.f32 %v328_v56, %v327_v55 }
 0x446   :  { %v330_v58 = vrot.slane %v329_v57, 2 }
 0x448   :  { %v331_v60 = vadd.f32 %v330_v58, %v329_v57 }
 0x44a   :  { %v332_v61 = vrot.slane %v331_v60, 1 }
 0x44c   :  { %v333_v3 = vadd.f32 %v332_v61, %v331_v60 }
 0x44e   :  { %v334_v9 = vmax.f32 %v333_v3, 1e-12 }
 0x450   :  { %1674 = vrcp.f32 %v334_v9 }
 0x45d   :  { %v1675_v14 = vpop.eup %1674 }
 0x45e   :  { %v336_v17 = vmul.f32 0.125, %v1675_v14 }
 0x460   :  { %v337_v22 = vmul.f32 %v336_v17, %v327_v55 }
 0x462   :  { %338 = vadd.xlane.f32.xlu0 %v337_v22 }
 0x478   :  { %65 = vperm.xlu0 %1631, %v50_v24  }
 0x4eb   :  { %v339_v27 = vpop.xlane.xlu0 %338 }
 0x4ec   :  { %v340_v29 = vmax.f32 %v339_v27, 1e-12 }
 0x4ee   :  { %1676 = vrcp.f32 %v340_v29 }
 0x4f3   :  { %v66_v32 = vpop.permute.xlu0 %65 }
 0x4f4   :  { %vm2081_vm4 = vcmp.eq.s32.totalorder %v63_v31, %v66_v32  ;;  %v263_v32 = vmul.f32 %v2055_v52, %v1908_v1 }
 0x4fb   :  { %v1677_v34 = vpop.eup %1676 }
 0x4fc   :  { %v342_v35 = vmul.f32 0.125, %v1677_v34 }
 0x4fe   :  { %v343_v38 = vmul.f32 %v342_v35, %v337_v22  ;;  %v279_v35 = vsel %vm242_vm2, %v263_v32, %v1908_v1  ;;  %v257_v1 = vmul.f32 %v2037_v36, %v1954_v23 }
 0x500   :  { %v344_v40 = vsel %vm2081_vm4, %v343_v38, 0.0  ;;  %v261_v38 = vmul.f32 %v2049_v50, %v1914_v4  ;;  %v262_v50 = vmul.f32 %v2052_v51, %v1917_v5 }
 0x501   :  { %v345_v45 = vpack.c.bf16 %v344_v40, %v344_v40  ;;  %v264_v40 = vmul.f32 %v2058_v53, %v1910_v2 }
 0x502   :  { %v278_v36 = vsel %vm242_vm2, %v262_v50, %v1917_v5 }
 0x503   :  { %346 = vxpose.xlu0.c.b16.start.end [1/1] (short) %v345_v45, 128  ;;  %v280_v52 = vsel %vm242_vm2, %v264_v40, %v1910_v2 }
 0x504   :  { %v503_v2 = vmul.f32 0.99, %v280_v52 }
 0x565   :  { %v354_v47 = vpop.trf.xlu0 }
 0x566   :  { %1546 = vmatprep.mubr.msk.bf16.mxu0 %vm362_vm5, %v354_v47  ;;  %v277_v47 = vsel %vm242_vm2, %v261_v38, %v1914_v4  ;;  %v255_v4 = vmul.f32 %v2031_v30, %v1939_v16 }
 0x567   :  { %v500_v53 = vmul.f32 0.99, %v277_v47 }
 0x568   :  { %v271_v30 = vsel %vm242_vm2, %v255_v4, %v1939_v16 }
 0x569   :  { %v355_v44 = vpop.trf.xlu0 }
 0x56a   :  { %1547 = vmatmul.mubr.msk.bf16.vlgmr.msra.gmra.mxu0 %vm362_vm5, %v355_v44  ;;  %v502_v44 = vmul.f32 0.99, %v279_v35 }
 0x56d   :  { %v356_v48 = vpop.trf.xlu0 }
 0x56e   :  { %1550 = vmatprep.mubr.msk.bf16.mxu0 %vm362_vm5, %v356_v48 }
 0x571   :  { %v357_v54 = vpop.trf.xlu0 }
 0x572   :  { %1551 = vmatmul.mubr.msk.bf16.gmra.mxu0 %vm362_vm5, %v357_v54 }
 0x575   :  { %v358_v55 = vpop.trf.xlu0 }
 0x576   :  { %1554 = vmatprep.mubr.msk.bf16.mxu0 %vm362_vm5, %v358_v55 }
 0x579   :  { %v359_v56 = vpop.trf.xlu0 }
 0x57a   :  { %1555 = vmatmul.mubr.msk.bf16.gmra.mxu0 %vm362_vm5, %v359_v56 }
 0x57d   :  { %v360_v57 = vpop.trf.xlu0 }
 0x57e   :  { %1558 = vmatprep.mubr.msk.bf16.mxu0 %vm362_vm5, %v360_v57  ;;  %v273_v57 = vsel %vm242_vm2, %v257_v1, %v1954_v23  ;;  %v259_v23 = vmul.f32 %v2043_v46, %v1944_v18 }
 0x580   :  { %v275_v52 = vsel %vm242_vm2, %v259_v23, %v1944_v18 }
 0x581   :  { %v361_v58 = vpop.trf.xlu0  ;;  %v498_v18 = vmul.f32 0.99, %v275_v52  ;;  %v254_v52 = vmul.f32 %v2028_v25, %v1950_v21  ;;  %v252_v25 = vmul.f32 %v2022_v13, %v1931_v12  ;;  %v250_v13 = vmul.f32 %v2016_v62, %v1927_v10 }
 0x582   :  { %1559 = vmatmul.mubr.msk.bf16.gmra.mxu0 %vm362_vm5, %v361_v58 }
 0x62a   :  { %v2095_v60 = vpop.f32.mrf.mxu0 }
 0x62c   :  { %v2097_v61 = vpop.f32.mrf.mxu0 }
 0x62e   :  { %v2099_v3 = vpop.f32.mrf.mxu0 }
 0x630   :  { %v2101_v9 = vpop.f32.mrf.mxu0 }
 0x632   :  { %v1552_v14 = vpop.f32.mrf.mxu0 }
 0x634   :  { %v441_v17 = vpop.f32.mrf.mxu0 }
 0x635   :  { %v508_v4 = vmul.f32 0.08, %v441_v17 }
 0x636   :  { %v2103_v22 = vpop.f32.mrf.mxu0 }
 0x638   :  { %v2105_v24 = vpop.f32.mrf.mxu0 }
 0x63a   :  { %v1556_v42 = vpop.f32.mrf.mxu0 }
 0x63b   :  { %v514_v1 = vmul.f32 0.08, %v1556_v42  ;;  %v251_v42 = vmul.f32 %v2019_v8, %v1919_v6  ;;  %v258_v8 = vmul.f32 %v2040_v39, %v1965_v28 }
 0x63c   :  { %v457_v27 = vpop.f32.mrf.mxu0 }
 0x63d   :  { %v512_v32 = vmul.f32 0.08, %v457_v27  ;;  %v510_v27 = vmul.f32 0.08, %v1552_v14  ;;  %v260_v14 = vmul.f32 %v2046_v49, %v1946_v19  ;;  %v267_v17 = vsel %vm242_vm2, %v251_v42, %v1919_v6 }
 0x63e   :  { %v1557_v29 = vpop.f32.mrf.mxu0 }
 0x63f   :  { %v515_v49 = vmul.f32 0.08, %v1557_v29  ;;  %v249_v29 = vmul.f32 %v2013_v59, %v1921_v7  ;;  %v256_v59 = vmul.f32 %v2034_v33, %v1960_v26 }
 0x640   :  { %v2109_v34 = vpop.f32.mrf.mxu0 }
 0x641   :  { %v513_v39 = vmul.f32 0.08, %v2109_v34  ;;  %v504_v34 = vmul.f32 0.08, %v2097_v61 }
 0x642   :  { %v1560_v45 = vpop.f32.mrf.mxu0 }
 0x643   :  { %v518_v48 = vmul.f32 0.08, %v1560_v45  ;;  %v496_v45 = vmul.f32 0.99, %v273_v57  ;;  %v276_v57 = vsel %vm242_vm2, %v260_v14, %v1946_v19  ;;  %v506_v19 = vmul.f32 0.08, %v2095_v60 }
 0x644   :  { %v473_v54 = vpop.f32.mrf.mxu0  ;;  %v490_v60 = vmul.f32 0.99, %v267_v17 }
 0x645   :  { %v2128_v55 = vadd.f32 %v518_v48, %v502_v44  ;;  %v516_v56 = vmul.f32 0.08, %v473_v54  ;;  %v501_v44 = vmul.f32 0.99, %v278_v36  ;;  %v253_v48 = vmul.f32 %v2025_v20, %v1937_v15 }
 0x646   :  { %v1561_v58 = vpop.f32.mrf.mxu0  ;;  %v2154_v16 = vadd.f32 %v512_v32, %v496_v45  ;;  %v499_v32 = vmul.f32 0.99, %v276_v57 }
 0x647   :  { %v2138_v35 = vadd.f32 %v516_v56, %v500_v53  ;;  %v519_v51 = vmul.f32 0.08, %v1561_v58  ;;  %v550_v38 = vmul.f32 %v2128_v55, %v2128_v55  ;;  %v494_v53 = vmul.f32 0.99, %v271_v30 }
 0x648   :  { %v476_v40 = vpop.f32.mrf.mxu0  ;;  %v269_v20 = vsel %vm242_vm2, %v253_v48, %v1937_v15  ;;  %v2174_v58 = vadd.f32 %v514_v1, %v498_v18  ;;  %v2193_v30 = vadd.f32 %v515_v49, %v499_v32 }
 0x649   :  { %v2147_v47 = vadd.f32 %v519_v51, %v503_v2  ;;  %v517_v5 = vmul.f32 0.08, %v476_v40  ;;  %580 = vadd.xlane.f32.xlu0 %v550_v38  ;;  %v548_v46 = vmul.f32 %v2138_v35, %v2138_v35  ;;  %v2169_v56 = vadd.f32 %v510_v27, %v494_v53 }
 0x64a   :  { %v544_v2 = vmul.f32 %v2154_v16, %v2154_v16  ;;  %v492_v36 = vmul.f32 0.99, %v269_v20  ;;  %v274_v38 = vsel %vm242_vm2, %v258_v8, %v1965_v28  ;;  %v546_v23 = vmul.f32 %v2174_v58, %v2174_v58 }
 0x64b   :  { %v2156_v54 = vadd.f32 %v517_v5, %v501_v44  ;;  %v551_v50 = vmul.f32 %v2147_v47, %v2147_v47  ;;  %v542_v6 = vmul.f32 %v2169_v56, %v2169_v56  ;;  %v265_v40 = vsel %vm242_vm2, %v249_v29, %v1921_v7 }
 0x64c   :  { %v2188_v51 = vadd.f32 %v508_v4, %v492_v36  ;;  %v497_v45 = vmul.f32 0.99, %v274_v38  ;;  %v2205_v28 = vadd.f32 %v506_v19, %v490_v60  ;;  %v272_v44 = vsel %vm242_vm2, %v256_v59, %v1960_v26 }
 0x64d   :  { %576 = vadd.xlane.f32.xlu0 %v548_v46  ;;  %582 = vadd.xlane.f32.xlu1 %v551_v50  ;;  %v549_v15 = vmul.f32 %v2156_v54, %v2156_v54  ;;  %v511_v5 = vmul.f32 0.08, %v2103_v22  ;;  %v547_v7 = vmul.f32 %v2193_v30, %v2193_v30  ;;  %v488_v48 = vmul.f32 0.99, %v265_v40 }
 0x64e   :  { %v2212_v27 = vadd.f32 %v513_v39, %v497_v45  ;;  %v540_v33 = vmul.f32 %v2188_v51, %v2188_v51  ;;  %v495_v1 = vmul.f32 0.99, %v272_v44  ;;  %v270_v26 = vsel %vm242_vm2, %v254_v52, %v1950_v21 }
 0x64f   :  { %v2220_v61 = vadd.f32 %v504_v34, %v488_v48  ;;  %v509_v46 = vmul.f32 0.08, %v2105_v24  ;;  %v538_v50 = vmul.f32 %v2205_v28, %v2205_v28  ;;  %v493_v14 = vmul.f32 0.99, %v270_v26 }
 0x650   :  { %v2225_v22 = vadd.f32 %v511_v5, %v495_v1  ;;  %v545_v53 = vmul.f32 %v2212_v27, %v2212_v27  ;;  %v268_v21 = vsel %vm242_vm2, %v252_v25, %v1931_v12  ;;  %v507_v20 = vmul.f32 0.08, %v2099_v3 }
 0x651   :  { %568 = vadd.xlane.f32.xlu1 %v544_v2  ;;  %578 = vadd.xlane.f32.xlu0 %v549_v15  ;;  %v2238_v18 = vadd.f32 %v509_v46, %v493_v14  ;;  %v536_v24 = vmul.f32 %v2220_v61, %v2220_v61  ;;  %v491_v4 = vmul.f32 0.99, %v268_v21  ;;  %v266_v12 = vsel %vm242_vm2, %v250_v13, %v1927_v10 }
 0x652   :  { %v543_v42 = vmul.f32 %v2225_v22, %v2225_v22  ;;  %v505_v3 = vmul.f32 0.08, %v2101_v9  ;;  %v489_v2 = vmul.f32 0.99, %v266_v12 }
 0x653   :  { %v2249_v57 = vadd.f32 %v507_v20, %v491_v4  ;;  %v541_v49 = vmul.f32 %v2238_v18, %v2238_v18 }
 0x654   :  { %v2254_v15 = vadd.f32 %v505_v3, %v489_v2 }
 0x655   :  { %564 = vadd.xlane.f32.xlu1 %v542_v6  ;;  %572 = vadd.xlane.f32.xlu0 %v546_v23  ;;  %v539_v62 = vmul.f32 %v2249_v57, %v2249_v57 }
 0x656   :  { %v537_v36 = vmul.f32 %v2254_v15, %v2254_v15 }
 0x659   :  { %560 = vadd.xlane.f32.xlu1 %v540_v33  ;;  %574 = vadd.xlane.f32.xlu0 %v547_v7 }
 0x65d   :  { %556 = vadd.xlane.f32.xlu1 %v538_v50  ;;  %570 = vadd.xlane.f32.xlu0 %v545_v53 }
 0x661   :  { %552 = vadd.xlane.f32.xlu1 %v536_v24  ;;  %566 = vadd.xlane.f32.xlu0 %v543_v42 }
 0x665   :  { %562 = vadd.xlane.f32.xlu0 %v541_v49 }
 0x669   :  { %558 = vadd.xlane.f32.xlu0 %v539_v62 }
 0x66d   :  { %554 = vadd.xlane.f32.xlu0 %v537_v36 }
 0x6d2   :  { %v581_v10 = vpop.xlane.xlu0 %580 }
 0x6d3   :  { %v598_v11 = vmax.f32 %v581_v10, 1e-24 }
 0x6d5   :  { %1678 = vrsqrt.f32 %v598_v11 }
 0x6d6   :  { %v577_v8 = vpop.xlane.xlu0 %576  ;;  %v583_v9 = vpop.xlane.xlu1 %582 }
 0x6d7   :  { %v596_v17 = vmax.f32 %v577_v8, 1e-24  ;;  %v599_v32 = vmax.f32 %v583_v9, 1e-24 }
 0x6d9   :  { %1680 = vrsqrt.f32 %v596_v17 }
 0x6da   :  { %1682 = vrsqrt.f32 %v599_v32  ;;  %v569_v19 = vpop.xlane.xlu1 %568  ;;  %v579_v29 = vpop.xlane.xlu0 %578 }
 0x6db   :  { %v592_v38 = vmax.f32 %v569_v19, 1e-24  ;;  %v597_v39 = vmax.f32 %v579_v29, 1e-24 }
 0x6dd   :  { %1684 = vrsqrt.f32 %v592_v38 }
 0x6de   :  { %1686 = vrsqrt.f32 %v597_v39  ;;  %v565_v6 = vpop.xlane.xlu1 %564  ;;  %v573_v23 = vpop.xlane.xlu0 %572 }
 0x6df   :  { %v590_v60 = vmax.f32 %v565_v6, 1e-24  ;;  %v594_v59 = vmax.f32 %v573_v23, 1e-24 }
 0x6e1   :  { %1688 = vrsqrt.f32 %v590_v60 }
 0x6e2   :  { %v1679_v40 = vpop.eup %1678  ;;  %1690 = vrsqrt.f32 %v594_v59  ;;  %v561_v45 = vpop.xlane.xlu1 %560 }
 0x6e3   :  { %v575_v34 = vpop.xlane.xlu0 %574  ;;  %v588_v44 = vmax.f32 %v561_v45, 1e-24  ;;  %v630_v33 = vmul.f32 %v1679_v40, %v2128_v55 }
 0x6e4   :  { %v595_v5 = vmax.f32 %v575_v34, 1e-24 }
 0x6e5   :  { %1692 = vrsqrt.f32 %v588_v44  ;;  %646 = vst [vmem:[#allocation6 + $0x70] sm:$0xff] %v630_v33 }
 0x6e6   :  { %v1681_v7 = vpop.eup %1680  ;;  %1694 = vrsqrt.f32 %v595_v5  ;;  %v557_v48 = vpop.xlane.xlu1 %556 }
 0x6e7   :  { %v571_v52 = vpop.xlane.xlu0 %570  ;;  %v1683_v1 = vpop.eup %1682  ;;  %v586_v26 = vmax.f32 %v557_v48, 1e-24  ;;  %v628_v50 = vmul.f32 %v1681_v7, %v2138_v35 }
 0x6e8   :  { %v593_v46 = vmax.f32 %v571_v52, 1e-24  ;;  %v631_v53 = vmul.f32 %v1683_v1, %v2147_v47 }
 0x6e9   :  { %1696 = vrsqrt.f32 %v586_v26  ;;  %644 = vst [vmem:[#allocation6 + $0x60] sm:$0xff] %v628_v50 }
 0x6ea   :  { %v1685_v25 = vpop.eup %1684  ;;  %1698 = vrsqrt.f32 %v593_v46  ;;  %v553_v14 = vpop.xlane.xlu1 %552  ;;  %647 = vst [vmem:[#allocation6 + $0x78] sm:$0xff] %v631_v53  ;;  %v2263_v55 = vpack.c.bf16 %v631_v53, %v630_v33 }
 0x6eb   :  { %v567_v21 = vpop.xlane.xlu0 %566  ;;  %v1687_v20 = vpop.eup %1686  ;;  %v584_v24 = vmax.f32 %v553_v14, 1e-24  ;;  %v624_v13 = vmul.f32 %v1685_v25, %v2154_v16 }
 0x6ec   :  { %v591_v42 = vmax.f32 %v567_v21, 1e-24  ;;  %1563 = vmatpush3.bf16.xpose.msra.mxu1 %v2263_v55  ;;  %1582 = vmatprep.subr.bf16.mxu0 %v2263_v55  ;;  %v629_v35 = vmul.f32 %v1687_v20, %v2156_v54 }
 0x6ed   :  { %1700 = vrsqrt.f32 %v584_v24  ;;  %1583 = vmatpush3.bf16.xpose.msra.mxu0 %v2263_v55  ;;  %1564 = vmatprep.subr.bf16.mxu1 %v1869_v0  ;;  %640 = vst [vmem:[#allocation6 + $0x40] sm:$0xff] %v624_v13 }
 0x6ee   :  { %v1689_v47 = vpop.eup %1688  ;;  %1702 = vrsqrt.f32 %v591_v42  ;;  %645 = vst [vmem:[#allocation6 + $0x68] sm:$0xff] %v629_v35  ;;  %v2271_v12 = vpack.c.bf16 %v629_v35, %v628_v50 }
 0x6ef   :  { %v563_v4 = vpop.xlane.xlu0 %562  ;;  %v1691_v3 = vpop.eup %1690  ;;  %v622_v49 = vmul.f32 %v1689_v47, %v2169_v56 }
 0x6f0   :  { %v589_v16 = vmax.f32 %v563_v4, 1e-24  ;;  %1584 = vmatprep.subr.bf16.mxu0 %v2271_v12  ;;  %v626_v54 = vmul.f32 %v1691_v3, %v2174_v58 }
 0x6f1   :  { %638 = vst [vmem:[#allocation6 + $0x30] sm:$0xff] %v622_v49 }
 0x6f2   :  { %1704 = vrsqrt.f32 %v589_v16  ;;  %v1693_v2 = vpop.eup %1692  ;;  %642 = vst [vmem:[#allocation6 + $0x50] sm:$0xff] %v626_v54 }
 0x6f3   :  { %v559_v62 = vpop.xlane.xlu0 %558  ;;  %v1695_v36 = vpop.eup %1694  ;;  %v620_v11 = vmul.f32 %v1693_v2, %v2188_v51 }
 0x6f4   :  { %v587_v10 = vmax.f32 %v559_v62, 1e-24  ;;  %1565 = vmatpush3.bf16.xpose.msra.mxu1 %v2271_v12  ;;  %v627_v8 = vmul.f32 %v1695_v36, %v2193_v30 }
 0x6f5   :  { %1585 = vmatpush3.bf16.xpose.msra.mxu0 %v2271_v12  ;;  %1566 = vmatprep.subr.bf16.mxu1 %v1869_v0  ;;  %636 = vst [vmem:[#allocation6 + $0x20] sm:$0xff] %v620_v11 }
 0x6f6   :  { %1706 = vrsqrt.f32 %v587_v10  ;;  %v1697_v56 = vpop.eup %1696  ;;  %643 = vst [vmem:[#allocation6 + $0x58] sm:$0xff] %v627_v8  ;;  %v653_v9 = vpack.c.bf16 %v627_v8, %v626_v54 }
 0x6f7   :  { %v555_v58 = vpop.xlane.xlu0 %554  ;;  %v1699_v17 = vpop.eup %1698  ;;  %v618_v19 = vmul.f32 %v1697_v56, %v2205_v28 }
 0x6f8   :  { %v585_v32 = vmax.f32 %v555_v58, 1e-24  ;;  %1586 = vmatprep.subr.bf16.mxu0 %v653_v9  ;;  %v625_v51 = vmul.f32 %v1699_v17, %v2212_v27 }
 0x6f9   :  { %634 = vst [vmem:[#allocation6 + $0x10] sm:$0xff] %v618_v19 }
 0x6fa   :  { %1708 = vrsqrt.f32 %v585_v32  ;;  %v1701_v30 = vpop.eup %1700  ;;  %641 = vst [vmem:[#allocation6 + $0x48] sm:$0xff] %v625_v51  ;;  %v652_v39 = vpack.c.bf16 %v625_v51, %v624_v13 }
 0x6fb   :  { %v1703_v29 = vpop.eup %1702  ;;  %v616_v38 = vmul.f32 %v1701_v30, %v2220_v61 }
 0x6fc   :  { %1567 = vmatpush3.bf16.xpose.msra.mxu1 %v653_v9  ;;  %v623_v6 = vmul.f32 %v1703_v29, %v2225_v22 }
 0x6fd   :  { %1587 = vmatpush3.bf16.xpose.msra.mxu0 %v653_v9  ;;  %1568 = vmatprep.subr.bf16.mxu1 %v1869_v0  ;;  %632 = vst [vmem:[#allocation6] sm:$0xff] %v616_v38 }
 0x6fe   :  { %1588 = vmatprep.subr.bf16.mxu0 %v652_v39  ;;  %639 = vst [vmem:[#allocation6 + $0x38] sm:$0xff] %v623_v6  ;;  %v651_v59 = vpack.c.bf16 %v623_v6, %v622_v49 }
 0x6ff   :  { %v1705_v23 = vpop.eup %1704 }
 0x700   :  { %v621_v28 = vmul.f32 %v1705_v23, %v2238_v18 }
 0x702   :  { %637 = vst [vmem:[#allocation6 + $0x28] sm:$0xff] %v621_v28  ;;  %v650_v45 = vpack.c.bf16 %v621_v28, %v620_v11 }
 0x703   :  { %v1707_v27 = vpop.eup %1706 }
 0x704   :  { %v619_v60 = vmul.f32 %v1707_v27, %v2249_v57  ;;  %1569 = vmatpush3.bf16.xpose.msra.mxu1 %v652_v39 }
 0x705   :  { %1589 = vmatpush3.bf16.xpose.msra.mxu0 %v652_v39  ;;  %1570 = vmatprep.subr.bf16.mxu1 %v1869_v0 }
 0x706   :  { %635 = vst [vmem:[#allocation6 + $0x18] sm:$0xff] %v619_v60  ;;  %1590 = vmatprep.subr.bf16.mxu0 %v651_v59  ;;  %v649_v18 = vpack.c.bf16 %v619_v60, %v618_v19 }
 0x707   :  { %v1709_v61 = vpop.eup %1708 }
 0x708   :  { %v617_v22 = vmul.f32 %v1709_v61, %v2254_v15 }
 0x70a   :  { %633 = vst [vmem:[#allocation6 + $0x8] sm:$0xff] %v617_v22  ;;  %v648_v40 = vpack.c.bf16 %v617_v22, %v616_v38 }
 0x70c   :  { %1598 = vmatprep.mubr.bf16.mxu0 %v648_v40  ;;  %1571 = vmatpush3.bf16.xpose.msra.mxu1 %v651_v59 }
 0x70d   :  { %1591 = vmatpush3.bf16.xpose.msra.mxu0 %v651_v59  ;;  %1572 = vmatprep.subr.bf16.mxu1 %v1869_v0 }
 0x70e   :  { %1592 = vmatprep.subr.bf16.mxu0 %v650_v45 }
 0x714   :  { %1573 = vmatpush3.bf16.xpose.msra.mxu1 %v650_v45 }
 0x715   :  { %1593 = vmatpush3.bf16.xpose.msra.mxu0 %v650_v45  ;;  %1574 = vmatprep.subr.bf16.mxu1 %v1869_v0 }
 0x716   :  { %1594 = vmatprep.subr.bf16.mxu0 %v649_v18 }
 0x71c   :  { %1575 = vmatpush3.bf16.xpose.msra.mxu1 %v649_v18 }
 0x71d   :  { %1595 = vmatpush3.bf16.xpose.msra.mxu0 %v649_v18  ;;  %1576 = vmatprep.subr.bf16.mxu1 %v1869_v0 }
 0x71e   :  { %1596 = vmatprep.subr.bf16.mxu0 %v648_v40 }
 0x724   :  { %1577 = vmatpush3.bf16.xpose.msra.mxu1 %v648_v40 }
 0x725   :  { %1597 = vmatpush3.bf16.xpose.msra.mxu0 %v648_v40 }
 0x72b   :  { %1579 = vmatmul.mubr.bf16.vlgmr.msra.gmra.mxu1 %v1999_v41 }
 0x72c   :  { %1599 = vmatmul.mubr.bf16.vlgmr.msra.gmra.mxu0 %v649_v18 }
 0x72d   :  { %1602 = vmatprep.mubr.bf16.mxu0 %v650_v45 }
 0x734   :  { %1603 = vmatmul.mubr.bf16.gmra.mxu0 %v651_v59 }
 0x735   :  { %1606 = vmatprep.mubr.bf16.mxu0 %v652_v39 }
 0x73c   :  { %1607 = vmatmul.mubr.bf16.gmra.mxu0 %v653_v9 }
 0x73d   :  { %1610 = vmatprep.mubr.bf16.mxu0 %v2271_v12 }
 0x744   :  { %1611 = vmatmul.mubr.bf16.gmra.mxu0 %v2263_v55 }
 0x7eb   :  { %v2376_v6 = vpop.f32.mrf.mxu1 }
 0x7ec   :  { %v1600_v57 = vpop.f32.mrf.mxu0 }
 0x7ed   :  { %v2305_v52 = vmul.f32 2.0, %v1600_v57  ;;  %v1580_v23 = vpop.f32.mrf.mxu1 }
 0x7ee   :  { %v762_v15 = vpop.f32.mrf.mxu0 }
 0x7ef   :  { %v2296_v34 = vmul.f32 2.0, %v762_v15  ;;  %v1017_v25 = vsel %vm53_vm1, %v2305_v52, -inf  ;;  %v693_v28 = vpop.f32.mrf.mxu1 }
 0x7f0   :  { %v1601_v44 = vpop.f32.mrf.mxu0  ;;  %v849_v28 = vadd.s32 72, %v2062_v63 }
 0x7f1   :  { %v2298_v5 = vmul.f32 2.0, %v1601_v44  ;;  %v1015_v41 = vsel %vm53_vm1, %v2296_v34, -inf  ;;  %v1581_v27 = vpop.f32.mrf.mxu1 }
 0x7f2   :  { %1031 = vmax.xlane.f32.xlu0 %v1015_v41  ;;  %v765_v33 = vpop.f32.mrf.mxu0 }
 0x7f3   :  { %v2303_v7 = vmul.f32 2.0, %v765_v33  ;;  %v1018_v1 = vsel %vm53_vm1, %v2298_v5, -inf }
 0x7f4   :  { %v1604_v48 = vpop.f32.mrf.mxu0 }
 0x7f5   :  { %v1016_v26 = vsel %vm53_vm1, %v2303_v7, -inf  ;;  %v2320_v20 = vmul.f32 2.0, %v1604_v48 }
 0x7f6   :  { %1037 = vmax.xlane.f32.xlu0 %v1018_v1  ;;  %1033 = vmax.xlane.f32.xlu1 %v1016_v26  ;;  %v778_v46 = vpop.f32.mrf.mxu0 }
 0x7f7   :  { %v2313_v53 = vmul.f32 2.0, %v778_v46  ;;  %v1021_v12 = vsel %vm53_vm1, %v2320_v20, -inf }
 0x7f8   :  { %v1605_v50 = vpop.f32.mrf.mxu0 }
 0x7f9   :  { %v2322_v24 = vmul.f32 2.0, %v1605_v50  ;;  %v1019_v42 = vsel %vm53_vm1, %v2313_v53, -inf }
 0x7fa   :  { %1035 = vmax.xlane.f32.xlu1 %v1017_v25  ;;  %v781_v14 = vpop.f32.mrf.mxu0 }
 0x7fb   :  { %v2318_v21 = vmul.f32 2.0, %v781_v14  ;;  %v1022_v3 = vsel %vm53_vm1, %v2322_v24, -inf }
 0x7fc   :  { %v1608_v55 = vpop.f32.mrf.mxu0 }
 0x7fd   :  { %v1020_v13 = vsel %vm53_vm1, %v2318_v21, -inf  ;;  %v2340_v2 = vmul.f32 2.0, %v1608_v55 }
 0x7fe   :  { %1039 = vmax.xlane.f32.xlu1 %v1019_v42  ;;  %1041 = vmax.xlane.f32.xlu0 %v1020_v13  ;;  %v794_v35 = vpop.f32.mrf.mxu0  ;;  %v841_v42 = vadd.s32 8, %v2062_v63  ;;  %v845_v13 = vadd.s32 40, %v2062_v63 }
 0x7ff   :  { %v2330_v4 = vmul.f32 2.0, %v794_v35  ;;  %v1025_v58 = vsel %vm53_vm1, %v2340_v2, -inf }
 0x800   :  { %v1609_v47 = vpop.f32.mrf.mxu0  ;;  %vm872_vm12 = vcmp.ne.s32.totalorder %v841_v42, %v2005_v43  ;;  %vm876_vm13 = vcmp.ne.s32.totalorder %v845_v13, %v2005_v43 }
 0x801   :  { %v2342_v62 = vmul.f32 2.0, %v1609_v47  ;;  %v1023_v36 = vsel %vm53_vm1, %v2330_v4, -inf  ;;  %vm888_vm14 = vmand %vm872_vm12, %vm53_vm1 }
 0x802   :  { %1043 = vmax.xlane.f32.xlu1 %v1021_v12  ;;  %1045 = vmax.xlane.f32.xlu0 %v1022_v3  ;;  %v797_v16 = vpop.f32.mrf.mxu0  ;;  %vm892_vm0 = vmand %vm876_vm13, %vm53_vm1 }
 0x803   :  { %v2338_v49 = vmul.f32 2.0, %v797_v16  ;;  %v1026_v9 = vsel %vm53_vm1, %v2342_v62, -inf }
 0x804   :  { %v1612_v54 = vpop.f32.mrf.mxu0 }
 0x805   :  { %v1024_v10 = vsel %vm53_vm1, %v2338_v49, -inf  ;;  %v2360_v19 = vmul.f32 2.0, %v1612_v54 }
 0x806   :  { %1047 = vmax.xlane.f32.xlu1 %v1023_v36  ;;  %1049 = vmax.xlane.f32.xlu0 %v1024_v10  ;;  %v810_v11 = vpop.f32.mrf.mxu0  ;;  %v844_v36 = vadd.s32 32, %v2062_v63 }
 0x807   :  { %v2350_v56 = vmul.f32 2.0, %v810_v11  ;;  %v1029_v38 = vsel %vm53_vm1, %v2360_v19, -inf  ;;  %v847_v11 = vadd.s32 56, %v2062_v63 }
 0x808   :  { %v1613_v8 = vpop.f32.mrf.mxu0  ;;  %vm875_vm15 = vcmp.ne.s32.totalorder %v844_v36, %v2005_v43 }
 0x809   :  { %v2362_v51 = vmul.f32 2.0, %v1613_v8  ;;  %v1027_v30 = vsel %vm53_vm1, %v2350_v56, -inf  ;;  %vm878_vm2 = vcmp.ne.s32.totalorder %v847_v11, %v2005_v43  ;;  %vm891_vm3 = vmand %vm875_vm15, %vm53_vm1  ;;  %v854_v11 = vadd.s32 112, %v2062_v63 }
 0x80a   :  { %1051 = vmax.xlane.f32.xlu1 %v1025_v58  ;;  %1053 = vmax.xlane.f32.xlu0 %v1026_v9  ;;  %v813_v17 = vpop.f32.mrf.mxu0  ;;  %vm2484_vm5 = vmand %vm878_vm2, %vm53_vm1 }
 0x80b   :  { %v2358_v32 = vmul.f32 2.0, %v813_v17  ;;  %v1030_v39 = vsel %vm53_vm1, %v2362_v51, -inf  ;;  %vm885_vm2 = vcmp.ne.s32.totalorder %v854_v11, %v2005_v43 }
 0x80d   :  { %v1028_v29 = vsel %vm53_vm1, %v2358_v32, -inf }
 0x80e   :  { %1055 = vmax.xlane.f32.xlu1 %v1027_v30  ;;  %1057 = vmax.xlane.f32.xlu0 %v1028_v29 }
 0x812   :  { %1059 = vmax.xlane.f32.xlu1 %v1029_v38  ;;  %1061 = vmax.xlane.f32.xlu0 %v1030_v39 }
 0x87b   :  { %v1032_v60 = vpop.xlane.xlu0 %1031 }
 0x87c   :  { %v2379_v59 = vsub.f32 %v2296_v34, %v1032_v60  ;;  %v843_v34 = vadd.s32 24, %v2062_v63 }
 0x87e   :  { %v1079_v61 = vmul.f32 1.442695, %v2379_v59  ;;  %vm874_vm8 = vcmp.ne.s32.totalorder %v843_v34, %v2005_v43  ;;  %v850_v34 = vadd.s32 80, %v2062_v63 }
 0x87f   :  { %v1038_v22 = vpop.xlane.xlu0 %1037  ;;  %v1034_v40 = vpop.xlane.xlu1 %1033  ;;  %vm890_vm9 = vmand %vm874_vm8, %vm53_vm1 }
 0x880   :  { %1710 = vpow2.f32 %v1079_v61  ;;  %v2383_v45 = vsub.f32 %v2298_v5, %v1038_v22  ;;  %v2387_v57 = vsub.f32 %v2303_v7, %v1034_v40  ;;  %v2427_v3 = vsel %vm890_vm9, 1.0, %v1869_v0 }
 0x881   :  { %v2466_v61 = vsel %vm888_vm14, 1.0, %v1869_v0  ;;  %v2472_v40 = vsel %vm892_vm0, 1.0, %v1869_v0 }
 0x882   :  { %v1085_v18 = vmul.f32 1.442695, %v2383_v45  ;;  %v1081_v41 = vmul.f32 1.442695, %v2387_v57 }
 0x883   :  { %v1036_v15 = vpop.xlane.xlu1 %1035 }
 0x884   :  { %1712 = vpow2.f32 %v1085_v18  ;;  %v2390_v44 = vsub.f32 %v2305_v52, %v1036_v15  ;;  %v842_v52 = vadd.s32 16, %v2062_v63  ;;  %v848_v18 = vadd.s32 64, %v2062_v63 }
 0x886   :  { %v1083_v5 = vmul.f32 1.442695, %v2390_v44  ;;  %vm873_vm10 = vcmp.ne.s32.totalorder %v842_v52, %v2005_v43  ;;  %vm879_vm9 = vcmp.ne.s32.totalorder %v848_v18, %v2005_v43 }
 0x887   :  { %v1040_v33 = vpop.xlane.xlu1 %1039  ;;  %v1042_v48 = vpop.xlane.xlu0 %1041  ;;  %vm889_vm11 = vmand %vm873_vm10, %vm53_vm1 }
 0x888   :  { %1714 = vpow2.f32 %v1083_v5  ;;  %v2398_v7 = vsub.f32 %v2313_v53, %v1040_v33  ;;  %v2401_v1 = vsub.f32 %v2318_v21, %v1042_v48  ;;  %v2410_v53 = vsel %vm887_vm7, 1.0, %v1869_v0  ;;  %vm895_vm12 = vmand %vm879_vm9, %vm53_vm1 }
 0x889   :  { %1716 = vpow2.f32 %v1081_v41  ;;  %v2445_v17 = vsel %vm889_vm11, 1.0, %v1869_v0  ;;  %vm880_vm7 = vcmp.ne.s32.totalorder %v849_v28, %v2005_v43  ;;  %vm881_vm11 = vcmp.ne.s32.totalorder %v850_v34, %v2005_v43 }
 0x88a   :  { %v1087_v26 = vmul.f32 1.442695, %v2398_v7  ;;  %v1089_v46 = vmul.f32 1.442695, %v2401_v1  ;;  %vm896_vm10 = vmand %vm880_vm7, %vm53_vm1  ;;  %v853_v28 = vadd.s32 104, %v2062_v63 }
 0x88b   :  { %v1044_v50 = vpop.xlane.xlu1 %1043  ;;  %v1046_v25 = vpop.xlane.xlu0 %1045  ;;  %vm897_vm13 = vmand %vm881_vm11, %vm53_vm1 }
 0x88c   :  { %v2413_v14 = vsub.f32 %v2320_v20, %v1044_v50  ;;  %v2416_v21 = vsub.f32 %v2322_v24, %v1046_v25  ;;  %1718 = vpow2.f32 %v1089_v46  ;;  %v2498_v25 = vsel %vm891_vm3, 1.0, %v1869_v0 }
 0x88d   :  { %v1711_v55 = vpop.eup %1710  ;;  %1720 = vpow2.f32 %v1087_v26 }
 0x88e   :  { %v1091_v35 = vmul.f32 1.442695, %v2413_v14  ;;  %v1093_v20 = vmul.f32 1.442695, %v2416_v21  ;;  %v1111_v47 = vmul.f32 %v1711_v55, %v2410_v53 }
 0x88f   :  { %v1048_v24 = vpop.xlane.xlu1 %1047  ;;  %v1050_v12 = vpop.xlane.xlu0 %1049 }
 0x890   :  { %v2430_v16 = vsub.f32 %v2330_v4, %v1048_v24  ;;  %v2433_v54 = vsub.f32 %v2338_v49, %v1050_v12  ;;  %1127 = vadd.xlane.f32.xlu0 %v1111_v47  ;;  %1722 = vpow2.f32 %v1093_v20 }
 0x891   :  { %v1713_v10 = vpop.eup %1712  ;;  %1724 = vpow2.f32 %v1091_v35 }
 0x892   :  { %v1095_v4 = vmul.f32 1.442695, %v2430_v16  ;;  %v1097_v49 = vmul.f32 1.442695, %v2433_v54  ;;  %v1114_v8 = vmul.f32 %v1713_v10, %v2427_v3  ;;  %v2530_v10 = vsel %vm896_vm10, 1.0, %v1869_v0 }
 0x893   :  { %v1052_v58 = vpop.xlane.xlu1 %1051  ;;  %v1054_v9 = vpop.xlane.xlu0 %1053 }
 0x894   :  { %v2448_v30 = vsub.f32 %v2340_v2, %v1052_v58  ;;  %1133 = vadd.xlane.f32.xlu0 %v1114_v8  ;;  %1726 = vpow2.f32 %v1097_v49  ;;  %v2454_v38 = vsub.f32 %v2342_v62, %v1054_v9  ;;  %v846_v2 = vadd.s32 48, %v2062_v63 }
 0x895   :  { %v1715_v29 = vpop.eup %1714  ;;  %1728 = vpow2.f32 %v1095_v4 }
 0x896   :  { %v1099_v39 = vmul.f32 1.442695, %v2448_v30  ;;  %v1113_v23 = vmul.f32 %v1715_v29, %v2445_v17  ;;  %v1717_v27 = vpop.eup %1716  ;;  %v1101_v15 = vmul.f32 1.442695, %v2454_v38  ;;  %vm877_vm6 = vcmp.ne.s32.totalorder %v846_v2, %v2005_v43 }
 0x897   :  { %v1056_v60 = vpop.xlane.xlu1 %1055  ;;  %v1058_v62 = vpop.xlane.xlu0 %1057  ;;  %v1112_v48 = vmul.f32 %v1717_v27, %v2466_v61  ;;  %vm893_vm8 = vmand %vm877_vm6, %vm53_vm1  ;;  %v911_v29 = vsel %vm895_vm12, 1.0, %v1869_v0  ;;  %v2542_v2 = vsel %vm897_vm13, 1.0, %v1869_v0  ;;  %vm884_vm6 = vcmp.ne.s32.totalorder %v853_v28, %v2005_v43 }
 0x898   :  { %1730 = vpow2.f32 %v1099_v39  ;;  %v2469_v22 = vsub.f32 %v2350_v56, %v1056_v60  ;;  %1131 = vadd.xlane.f32.xlu1 %v1113_v23  ;;  %v2492_v33 = vsub.f32 %v2358_v32, %v1058_v62  ;;  %v2506_v32 = vsel %vm2484_vm5, 1.0, %v1869_v0  ;;  %vm901_vm5 = vmand %vm885_vm2, %vm53_vm1 }
 0x899   :  { %v1719_v41 = vpop.eup %1718  ;;  %v2525_v36 = vsel %vm893_vm8, 1.0, %v1869_v0  ;;  %v696_v23 = vmul.f32 10.0, %v2376_v6  ;;  %vm900_vm7 = vmand %vm884_vm6, %vm53_vm1 }
 0x89a   :  { %v1103_v5 = vmul.f32 1.442695, %v2469_v22  ;;  %v1721_v52 = vpop.eup %1720  ;;  %v1116_v50 = vmul.f32 %v1719_v41, %v2472_v40  ;;  %v1105_v13 = vmul.f32 1.442695, %v2492_v33  ;;  %v2563_v41 = vsel %vm901_vm5, 1.0, %v1869_v0 }
 0x89b   :  { %v1060_v26 = vpop.xlane.xlu1 %1059  ;;  %v1062_v46 = vpop.xlane.xlu0 %1061  ;;  %v1115_v47 = vmul.f32 %v1721_v52, %v2498_v25  ;;  %v2558_v6 = vsel %vm53_vm1, %v696_v23, -inf }
 0x89c   :  { %1732 = vpow2.f32 %v1103_v5  ;;  %v2501_v55 = vsub.f32 %v2360_v19, %v1060_v26  ;;  %1129 = vadd.xlane.f32.xlu1 %v1112_v48  ;;  %1137 = vadd.xlane.f32.xlu0 %v1116_v50  ;;  %v852_v19 = vadd.s32 96, %v2062_v63  ;;  %v2520_v20 = vsub.f32 %v2362_v51, %v1062_v46 }
 0x89d   :  { %1734 = vpow2.f32 %v1101_v15  ;;  %v1723_v42 = vpop.eup %1722  ;;  %v851_v51 = vadd.s32 88, %v2062_v63  ;;  %v855_v15 = vadd.s32 120, %v2062_v63  ;;  %v919_v48 = vshra.s32 %v2062_v63, 1 }
 0x89e   :  { %v1107_v35 = vmul.f32 1.442695, %v2501_v55  ;;  %v1725_v24 = vpop.eup %1724  ;;  %v1118_v12 = vmul.f32 %v1723_v42, %v2506_v32  ;;  %vm883_vm14 = vcmp.ne.s32.totalorder %v852_v19, %v2005_v43  ;;  %v1109_v49 = vmul.f32 1.442695, %v2520_v20 }
 0x89f   :  { %v1117_v8 = vmul.f32 %v1725_v24, %v2525_v36  ;;  %vm899_vm15 = vmand %vm883_vm14, %vm53_vm1  ;;  %vm882_vm0 = vcmp.ne.s32.totalorder %v851_v51, %v2005_v43  ;;  %vm886_vm8 = vcmp.ne.s32.totalorder %v855_v15, %v2005_v43  ;;  %v916_v19 = vsel %vm900_vm7, 1.0, %v1869_v0 }
 0x8a0   :  { %1736 = vpow2.f32 %v1107_v35  ;;  %1135 = vadd.xlane.f32.xlu1 %v1115_v47  ;;  %1141 = vadd.xlane.f32.xlu0 %v1118_v12  ;;  %v915_v62 = vsel %vm899_vm15, 1.0, %v1869_v0  ;;  %vm898_vm3 = vmand %vm882_vm0, %vm53_vm1  ;;  %vm935_vm9 = vcmp.eq.s32.totalorder %v919_v48, %v63_v31  ;;  %v2578_v63 = vmul.f32 0.0, %v2466_v61 }
 0x8a1   :  { %v1727_v4 = vpop.eup %1726  ;;  %1738 = vpow2.f32 %v1105_v13  ;;  %v914_v5 = vsel %vm898_vm3, 1.0, %v1869_v0  ;;  %vm902_vm10 = vmand %vm886_vm8, %vm53_vm1  ;;  %v2586_v47 = vmul.f32 0.0, %v2445_v17  ;;  %v2593_v43 = vmul.f32 0.0, %v2498_v25 }
 0x8a2   :  { %v1729_v58 = vpop.eup %1728  ;;  %v1120_v9 = vmul.f32 %v1727_v4, %v2530_v10  ;;  %1740 = vpow2.f32 %v1109_v49  ;;  %vm967_vm11 = vmand %vm935_vm9, %vm53_vm1  ;;  %v2583_v35 = vsel %vm902_vm10, 1.0, %v1869_v0  ;;  %v2597_v12 = vmul.f32 0.0, %v2427_v3 }
 0x8a3   :  { %v1119_v27 = vmul.f32 %v1729_v58, %v911_v29  ;;  %v983_v31 = vsel %vm967_vm11, 1.0, %v1869_v0  ;;  %v2600_v17 = vmul.f32 0.0, %v2525_v36  ;;  %v2605_v0 = vmul.f32 0.0, %v2472_v40 }
 0x8a4   :  { %1139 = vadd.xlane.f32.xlu1 %v1117_v8  ;;  %1145 = vadd.xlane.f32.xlu0 %v1120_v9  ;;  %v999_v61 = vmul.f32 %v983_v31, %v2410_v53  ;;  %v2607_v53 = vmul.f32 0.0, %v911_v29  ;;  %v2612_v25 = vmul.f32 0.0, %v2506_v32  ;;  %v2615_v3 = vmul.f32 0.0, %v2530_v10 }
 0x8a5   :  { %v1731_v39 = vpop.eup %1730  ;;  %v2620_v36 = vmul.f32 0.0, %v2542_v2  ;;  %v2624_v40 = vmul.f32 0.0, %v914_v5  ;;  %v2627_v32 = vmul.f32 0.0, %v915_v62  ;;  %v2630_v10 = vmul.f32 0.0, %v916_v19 }
 0x8a6   :  { %v1121_v60 = vmul.f32 %v1731_v39, %v2542_v2  ;;  %vm716_vm1 = vcmask 7168  }
 0x8a8   :  { %1143 = vadd.xlane.f32.xlu1 %v1119_v27  ;;  %1147 = vadd.xlane.f32.xlu0 %v1121_v60 }
 0x8a9   :  { %v1733_v18 = vpop.eup %1732 }
 0x8aa   :  { %v1735_v56 = vpop.eup %1734  ;;  %v1123_v34 = vmul.f32 %v1733_v18, %v915_v62 }
 0x8ab   :  { %v1122_v46 = vmul.f32 %v1735_v56, %v914_v5 }
 0x8ac   :  { %698 = vmax.xlane.f32.xlu1 %v2558_v6  ;;  %1151 = vadd.xlane.f32.xlu0 %v1123_v34 }
 0x8ad   :  { %v1737_v52 = vpop.eup %1736 }
 0x8ae   :  { %v1125_v26 = vmul.f32 %v1737_v52, %v2563_v41  ;;  %v1739_v50 = vpop.eup %1738 }
 0x8af   :  { %v1124_v42 = vmul.f32 %v1739_v50, %v916_v19  ;;  %v1741_v13 = vpop.eup %1740 }
 0x8b0   :  { %1149 = vadd.xlane.f32.xlu1 %v1122_v46  ;;  %1155 = vadd.xlane.f32.xlu0 %v1125_v26  ;;  %v1126_v24 = vmul.f32 %v1741_v13, %v2583_v35 }
 0x8b4   :  { %1153 = vadd.xlane.f32.xlu1 %v1124_v42  ;;  %1273 = vadd.xlane.f32.xlu0 %v2578_v63 }
 0x8b8   :  { %1157 = vadd.xlane.f32.xlu1 %v1126_v24  ;;  %1275 = vadd.xlane.f32.xlu0 %v2586_v47 }
 0x8bc   :  { %1271 = vadd.xlane.f32.xlu1 %v999_v61  ;;  %1279 = vadd.xlane.f32.xlu0 %v2593_v43 }
 0x8c0   :  { %1277 = vadd.xlane.f32.xlu1 %v2597_v12  ;;  %1283 = vadd.xlane.f32.xlu0 %v2600_v17 }
 0x8c4   :  { %1281 = vadd.xlane.f32.xlu1 %v2605_v0  ;;  %1287 = vadd.xlane.f32.xlu0 %v2607_v53 }
 0x8c8   :  { %1285 = vadd.xlane.f32.xlu1 %v2612_v25  ;;  %1289 = vadd.xlane.f32.xlu0 %v2615_v3 }
 0x8cc   :  { %1291 = vadd.xlane.f32.xlu1 %v2620_v36 }
 0x8d0   :  { %1293 = vadd.xlane.f32.xlu1 %v2624_v40 }
 0x8d4   :  { %1295 = vadd.xlane.f32.xlu1 %v2627_v32 }
 0x8d8   :  { %1297 = vadd.xlane.f32.xlu1 %v2630_v10 }
 0x919   :  { %v1128_v51 = vpop.xlane.xlu0 %1127 }
 0x91a   :  { %v1159_v11 = vadd.f32 1e-12, %v1128_v51 }
 0x91c   :  { %1742 = vlog2.f32 %v1159_v11 }
 0x91d   :  { %v1134_v4 = vpop.xlane.xlu0 %1133 }
 0x91e   :  { %v1162_v49 = vadd.f32 1e-12, %v1134_v4 }
 0x920   :  { %1744 = vlog2.f32 %v1162_v49 }
 0x921   :  { %v1132_v8 = vpop.xlane.xlu1 %1131 }
 0x922   :  { %v1161_v58 = vadd.f32 1e-12, %v1132_v8 }
 0x924   :  { %1746 = vlog2.f32 %v1161_v58 }
 0x925   :  { %v1130_v9 = vpop.xlane.xlu1 %1129  ;;  %v1138_v2 = vpop.xlane.xlu0 %1137 }
 0x926   :  { %v1160_v29 = vadd.f32 1e-12, %v1130_v9  ;;  %v1164_v46 = vadd.f32 1e-12, %v1138_v2 }
 0x928   :  { %1748 = vlog2.f32 %v1160_v29 }
 0x929   :  { %v1743_v39 = vpop.eup %1742  ;;  %v1136_v23 = vpop.xlane.xlu1 %1135 }
 0x92a   :  { %v1176_v28 = vmul.f32 0.6931472, %v1743_v39  ;;  %v1163_v27 = vadd.f32 1e-12, %v1136_v23  ;;  %v1142_v60 = vpop.xlane.xlu0 %1141 }
 0x92b   :  { %v1166_v18 = vadd.f32 1e-12, %v1142_v60 }
 0x92c   :  { %v1207_v62 = vsub.f32 %v2379_v59, %v1176_v28  ;;  %1750 = vlog2.f32 %v1163_v27 }
 0x92d   :  { %v1140_v15 = vpop.xlane.xlu1 %1139  ;;  %v1745_v48 = vpop.eup %1744 }
 0x92e   :  { %v1165_v56 = vadd.f32 1e-12, %v1140_v15  ;;  %v1146_v34 = vpop.xlane.xlu0 %1145  ;;  %v1223_v5 = vmul.f32 %v1207_v62, %v999_v61  ;;  %v1182_v19 = vmul.f32 0.6931472, %v1745_v48 }
 0x92f   :  { %v1168_v52 = vadd.f32 1e-12, %v1146_v34 }
 0x930   :  { %1752 = vlog2.f32 %v1165_v56  ;;  %1239 = vadd.xlane.f32.xlu1 %v1223_v5  ;;  %v1210_v11 = vsub.f32 %v2383_v45, %v1182_v19 }
 0x931   :  { %v1747_v26 = vpop.eup %1746  ;;  %1754 = vlog2.f32 %v1166_v18  ;;  %v1144_v50 = vpop.xlane.xlu1 %1143 }
 0x932   :  { %v1180_v42 = vmul.f32 0.6931472, %v1747_v26  ;;  %1756 = vlog2.f32 %v1168_v52  ;;  %v1148_v4 = vpop.xlane.xlu0 %1147  ;;  %v1167_v58 = vadd.f32 1e-12, %v1144_v50 }
 0x933   :  { %1758 = vlog2.f32 %v1164_v46 }
 0x934   :  { %v1209_v13 = vsub.f32 %v2390_v44, %v1180_v42  ;;  %v1226_v44 = vmul.f32 %v1210_v11, %v2597_v12  ;;  %v1014_v12 = vmul.f32 0.0, %v2583_v35 }
 0x935   :  { %v1749_v59 = vpop.eup %1748  ;;  %v699_v31 = vpop.xlane.xlu1 %698 }
 0x936   :  { %v1178_v24 = vmul.f32 0.6931472, %v1749_v59  ;;  %v700_v51 = vsub.f32 %v2558_v6, %v699_v31  ;;  %v1225_v61 = vmul.f32 %v1209_v13, %v2586_v47  ;;  %v2642_v6 = vmul.f32 0.0, %v2563_v41  ;;  %v1152_v23 = vpop.xlane.xlu0 %1151 }
 0x937   :  { %v1169_v47 = vadd.f32 1e-12, %v1148_v4  ;;  %v1171_v41 = vadd.f32 1e-12, %v1152_v23 }
 0x938   :  { %v701_v49 = vmul.f32 1.442695, %v700_v51  ;;  %1243 = vadd.xlane.f32.xlu0 %v1225_v61  ;;  %v1208_v8 = vsub.f32 %v2387_v57, %v1178_v24 }
 0x939   :  { %v1150_v9 = vpop.xlane.xlu1 %1149  ;;  %v1751_v39 = vpop.eup %1750 }
 0x93a   :  { %1760 = vpow2.f32 %v701_v49  ;;  %v1170_v29 = vadd.f32 1e-12, %v1150_v9  ;;  %v1224_v2 = vmul.f32 %v1208_v8, %v2578_v63  ;;  %v1184_v27 = vmul.f32 0.6931472, %v1751_v39  ;;  %v1156_v46 = vpop.xlane.xlu0 %1155 }
 0x93c   :  { %1762 = vlog2.f32 %v1170_v29  ;;  %1245 = vadd.xlane.f32.xlu0 %v1226_v44  ;;  %1241 = vadd.xlane.f32.xlu1 %v1224_v2  ;;  %v1211_v26 = vsub.f32 %v2398_v7, %v1184_v27 }
 0x93d   :  { %v1753_v45 = vpop.eup %1752  ;;  %v1154_v28 = vpop.xlane.xlu1 %1153  ;;  %1764 = vlog2.f32 %v1167_v58 }
 0x93e   :  { %v1755_v57 = vpop.eup %1754  ;;  %v1188_v60 = vmul.f32 0.6931472, %v1753_v45  ;;  %v1172_v62 = vadd.f32 1e-12, %v1154_v28  ;;  %v1227_v35 = vmul.f32 %v1211_v26, %v2593_v43  ;;  %v1274_v28 = vpop.xlane.xlu0 %1273 }
 0x93f   :  { %v1757_v18 = vpop.eup %1756  ;;  %v1190_v15 = vmul.f32 0.6931472, %v1755_v57 }
 0x940   :  { %1766 = vlog2.f32 %v1172_v62  ;;  %1299 = vadd.xlane.f32.xlu1 %v2642_v6  ;;  %v1213_v63 = vsub.f32 %v2413_v14, %v1188_v60  ;;  %v1759_v34 = vpop.eup %1758  ;;  %v1194_v5 = vmul.f32 0.6931472, %v1757_v18  ;;  %v1173_v14 = vadd.f32 1e-12, %v1156_v46 }
 0x941   :  { %1768 = vlog2.f32 %v1169_v47  ;;  %v1158_v56 = vpop.xlane.xlu1 %1157  ;;  %v1186_v50 = vmul.f32 0.6931472, %v1759_v34  ;;  %v1214_v19 = vsub.f32 %v2416_v21, %v1190_v15 }
 0x942   :  { %v1174_v48 = vadd.f32 1e-12, %v1158_v56  ;;  %v1229_v52 = vmul.f32 %v1213_v63, %v2600_v17  ;;  %v1216_v42 = vsub.f32 %v2433_v54, %v1194_v5  ;;  %v1276_v27 = vpop.xlane.xlu0 %1275  ;;  %v1304_v63 = vadd.f32 1e-12, %v1274_v28 }
 0x943   :  { %v1212_v17 = vsub.f32 %v2401_v1, %v1186_v50  ;;  %v1230_v31 = vmul.f32 %v1214_v19, %v2612_v25 }
 0x944   :  { %1770 = vlog2.f32 %v1174_v48  ;;  %1251 = vadd.xlane.f32.xlu0 %v1229_v52  ;;  %1301 = vadd.xlane.f32.xlu1 %v1014_v12  ;;  %v1232_v24 = vmul.f32 %v1216_v42, %v2615_v3 }
 0x945   :  { %1772 = vlog2.f32 %v1171_v41  ;;  %v1228_v4 = vmul.f32 %v1212_v17, %v2605_v0 }
 0x946   :  { %1774 = vlog2.f32 %v1173_v14  ;;  %v1280_v62 = vpop.xlane.xlu0 %1279 }
 0x947   :  { %v1761_v13 = vpop.eup %1760  ;;  %1776 = vrcp.f32 %v1304_v63  ;;  %v1307_v41 = vadd.f32 1e-12, %v1280_v62 }
 0x948   :  { %1247 = vadd.xlane.f32.xlu0 %v1227_v35  ;;  %707 = vadd.xlane.f32.xlu1 %v1761_v13  ;;  %v703_v29 = vsel %vm2081_vm4, %v1761_v13, 0.0 }
 0x949   :  { %v1763_v59 = vpop.eup %1762 }
 0x94a   :  { %v1198_v7 = vmul.f32 0.6931472, %v1763_v59  ;;  %v1765_v51 = vpop.eup %1764  ;;  %v1284_v18 = vpop.xlane.xlu0 %1283 }
 0x94b   :  { %v1192_v54 = vmul.f32 0.6931472, %v1765_v51  ;;  %v1309_v52 = vadd.f32 1e-12, %v1284_v18 }
 0x94c   :  { %1253 = vadd.xlane.f32.xlu0 %v1230_v31  ;;  %1257 = vadd.xlane.f32.xlu1 %v1232_v24  ;;  %v1218_v43 = vsub.f32 %v2454_v38, %v1198_v7 }
 0x94d   :  { %v1767_v21 = vpop.eup %1766  ;;  %v1215_v38 = vsub.f32 %v2430_v16, %v1192_v54 }
 0x94e   :  { %v1769_v61 = vpop.eup %1768  ;;  %v1202_v11 = vmul.f32 0.6931472, %v1767_v21  ;;  %v1234_v49 = vmul.f32 %v1218_v43, %v2624_v40 }
 0x94f   :  { %v1196_v3 = vmul.f32 0.6931472, %v1769_v61  ;;  %v1231_v44 = vmul.f32 %v1215_v38, %v2607_v53  ;;  %v1272_v53 = vpop.xlane.xlu1 %1271 }
 0x950   :  { %1249 = vadd.xlane.f32.xlu0 %v1228_v4  ;;  %1261 = vadd.xlane.f32.xlu1 %v1234_v49  ;;  %v1220_v1 = vsub.f32 %v2492_v33, %v1202_v11  ;;  %v1303_v15 = vadd.f32 1e-12, %v1272_v53 }
 0x951   :  { %v1771_v25 = vpop.eup %1770  ;;  %v1217_v33 = vsub.f32 %v2448_v30, %v1196_v3 }
 0x952   :  { %v1773_v8 = vpop.eup %1772  ;;  %v1206_v58 = vmul.f32 0.6931472, %v1771_v25  ;;  %v1236_v9 = vmul.f32 %v1220_v1, %v2630_v10 }
 0x953   :  { %v1200_v40 = vmul.f32 0.6931472, %v1773_v8  ;;  %v1775_v39 = vpop.eup %1774  ;;  %v1233_v10 = vmul.f32 %v1217_v33, %v2620_v36  ;;  %v1278_v23 = vpop.xlane.xlu1 %1277 }
 0x954   :  { %704 = vadd.xlane.f32.xlu0 %v703_v29  ;;  %1265 = vadd.xlane.f32.xlu1 %v1236_v9  ;;  %v1222_v0 = vsub.f32 %v2520_v20, %v1206_v58  ;;  %v1204_v45 = vmul.f32 0.6931472, %v1775_v39  ;;  %v1306_v56 = vadd.f32 1e-12, %v1278_v23  ;;  %v1777_v26 = vpop.eup %1776 }
 0x955   :  { %v1219_v16 = vsub.f32 %v2469_v22, %v1200_v40 }
 0x956   :  { %v1238_v2 = vmul.f32 %v1222_v0, %v1014_v12  ;;  %v1221_v37 = vsub.f32 %v2501_v55, %v1204_v45  ;;  %v1288_v12 = vpop.xlane.xlu0 %1287  ;;  %v1305_v55 = vadd.f32 1e-12, %v1276_v27 }
 0x957   :  { %v1235_v47 = vmul.f32 %v1219_v16, %v2627_v32  ;;  %v1282_v30 = vpop.xlane.xlu1 %1281  ;;  %v1311_v21 = vadd.f32 1e-12, %v1288_v12 }
 0x958   :  { %1255 = vadd.xlane.f32.xlu0 %v1231_v44  ;;  %1269 = vadd.xlane.f32.xlu1 %v1238_v2  ;;  %v1237_v20 = vmul.f32 %v1221_v37, %v2642_v6  ;;  %1778 = vrcp.f32 %v1305_v55  ;;  %v1308_v46 = vadd.f32 1e-12, %v1282_v30 }
 0x959   :  { %1780 = vrcp.f32 %v1303_v15 }
 0x95a   :  { %v1290_v6 = vpop.xlane.xlu0 %1289  ;;  %1782 = vrcp.f32 %v1307_v41 }
 0x95b   :  { %v1286_v57 = vpop.xlane.xlu1 %1285  ;;  %1784 = vrcp.f32 %v1306_v56  ;;  %v1312_v17 = vadd.f32 1e-12, %v1290_v6 }
 0x95c   :  { %1259 = vadd.xlane.f32.xlu0 %v1233_v10  ;;  %v1310_v42 = vadd.f32 1e-12, %v1286_v57  ;;  %1786 = vrcp.f32 %v1309_v52 }
 0x95d   :  { %1788 = vrcp.f32 %v1308_v46 }
 0x95e   :  { %1790 = vrcp.f32 %v1310_v42 }
 0x95f   :  { %v1292_v60 = vpop.xlane.xlu1 %1291  ;;  %1792 = vrcp.f32 %v1312_v17 }
 0x960   :  { %1263 = vadd.xlane.f32.xlu0 %v1235_v47  ;;  %v1313_v9 = vadd.f32 1e-12, %v1292_v60  ;;  %1794 = vrcp.f32 %v1311_v21 }
 0x963   :  { %v1294_v36 = vpop.xlane.xlu1 %1293 }
 0x964   :  { %1267 = vadd.xlane.f32.xlu0 %v1237_v20  ;;  %v1314_v11 = vadd.f32 1e-12, %v1294_v36 }
 0x965   :  { %v1779_v19 = vpop.eup %1778 }
 0x966   :  { %v1781_v13 = vpop.eup %1780  ;;  %1796 = vrcp.f32 %v1314_v11 }
 0x967   :  { %v1296_v22 = vpop.xlane.xlu1 %1295  ;;  %v1783_v43 = vpop.eup %1782  ;;  %1798 = vrcp.f32 %v1313_v9 }
 0x968   :  { %v1785_v54 = vpop.eup %1784  ;;  %v1315_v33 = vadd.f32 1e-12, %v1296_v22 }
 0x969   :  { %v1787_v2 = vpop.eup %1786 }
 0x96a   :  { %v1789_v37 = vpop.eup %1788 }
 0x96b   :  { %v1298_v32 = vpop.xlane.xlu1 %1297  ;;  %v1791_v28 = vpop.eup %1790 }
 0x96c   :  { %v1316_v38 = vadd.f32 1e-12, %v1298_v32  ;;  %v1793_v12 = vpop.eup %1792 }
 0x96e   :  { %1800 = vrcp.f32 %v1316_v38 }
 0x96f   :  { %1802 = vrcp.f32 %v1315_v33 }
 0x9b9   :  { %v1240_v34 = vpop.xlane.xlu1 %1239 }
 0x9ba   :  { %v1320_v24 = vmul.f32 %v1781_v13, %v1240_v34  ;;  %v1795_v34 = vpop.eup %1794 }
 0x9bc   :  { %v1397_v1 = vsel %vm716_vm1, %v1320_v24, 0.0 }
 0x9c1   :  { %v1244_v5 = vpop.xlane.xlu0 %1243 }
 0x9c2   :  { %v1324_v51 = vmul.f32 %v1779_v19, %v1244_v5 }
 0x9c4   :  { %v1383_v25 = vmul.f32 0.0, %v1324_v51 }
 0x9c5   :  { %v1242_v48 = vpop.xlane.xlu1 %1241  ;;  %v1246_v14 = vpop.xlane.xlu0 %1245 }
 0x9c6   :  { %v1322_v50 = vmul.f32 %v1777_v26, %v1242_v48  ;;  %v1326_v8 = vmul.f32 %v1785_v54, %v1246_v14  ;;  %v1400_v0 = vsel %vm716_vm1, %v1383_v25, 0.0  ;;  %v1797_v26 = vpop.eup %1796 }
 0x9c7   :  { %v1799_v42 = vpop.eup %1798 }
 0x9c8   :  { %v1382_v59 = vmul.f32 0.0, %v1322_v50  ;;  %v1384_v40 = vmul.f32 0.0, %v1326_v8  ;;  %v1801_v17 = vpop.eup %1800 }
 0x9c9   :  { %v1300_v35 = vpop.xlane.xlu1 %1299  ;;  %v1803_v51 = vpop.eup %1802 }
 0x9ca   :  { %v1398_v61 = vsel %vm716_vm1, %v1382_v59, 0.0  ;;  %v1402_v20 = vsel %vm716_vm1, %v1384_v40, 0.0  ;;  %v1317_v57 = vadd.f32 1e-12, %v1300_v35 }
 0x9cb   :  { %v1399_v58 = vadd.f32 %v1398_v61, %v1397_v1 }
 0x9cd   :  { %v1252_v7 = vpop.xlane.xlu0 %1251  ;;  %v1302_v31 = vpop.xlane.xlu1 %1301  ;;  %v1401_v39 = vadd.f32 %v1400_v0, %v1399_v58 }
 0x9ce   :  { %v1332_v10 = vmul.f32 %v1787_v2, %v1252_v7  ;;  %v1318_v16 = vadd.f32 1e-12, %v1302_v31 }
 0x9cf   :  { %v1403_v27 = vadd.f32 %v1402_v20, %v1401_v39 }
 0x9d0   :  { %v1387_v60 = vmul.f32 0.0, %v1332_v10  ;;  %1804 = vrcp.f32 %v1318_v16 }
 0x9d1   :  { %v1248_v4 = vpop.xlane.xlu0 %1247  ;;  %v708_v49 = vpop.xlane.xlu1 %707 }
 0x9d2   :  { %v1328_v3 = vmul.f32 %v1783_v43, %v1248_v4  ;;  %v709_v23 = vadd.f32 1e-12, %v708_v49  ;;  %v1408_v6 = vsel %vm716_vm1, %v1387_v60, 0.0 }
 0x9d4   :  { %v1385_v44 = vmul.f32 0.0, %v1328_v3  ;;  %1806 = vlog2.f32 %v709_v23 }
 0x9d5   :  { %v1254_v29 = vpop.xlane.xlu0 %1253  ;;  %v1258_v45 = vpop.xlane.xlu1 %1257  ;;  %1808 = vrcp.f32 %v1317_v57 }
 0x9d6   :  { %v1404_v53 = vsel %vm716_vm1, %v1385_v44, 0.0  ;;  %v1334_v62 = vmul.f32 %v1791_v28, %v1254_v29  ;;  %v1338_v56 = vmul.f32 %v1793_v12, %v1258_v45 }
 0x9d7   :  { %v1405_v18 = vadd.f32 %v1404_v53, %v1403_v27 }
 0x9d8   :  { %v1388_v41 = vmul.f32 0.0, %v1334_v62  ;;  %v1390_v14 = vmul.f32 0.0, %v1338_v56 }
 0x9d9   :  { %v1250_v47 = vpop.xlane.xlu0 %1249  ;;  %v1262_v22 = vpop.xlane.xlu1 %1261 }
 0x9da   :  { %v1330_v30 = vmul.f32 %v1789_v37, %v1250_v47  ;;  %v1410_v50 = vsel %vm716_vm1, %v1388_v41, 0.0  ;;  %v1342_v35 = vmul.f32 %v1797_v26, %v1262_v22  ;;  %v1414_v43 = vsel %vm716_vm1, %v1390_v14, 0.0 }
 0x9dc   :  { %v1386_v36 = vmul.f32 0.0, %v1330_v30  ;;  %v1392_v21 = vmul.f32 0.0, %v1342_v35 }
 0x9dd   :  { %v705_v63 = vpop.xlane.xlu0 %704  ;;  %v1266_v46 = vpop.xlane.xlu1 %1265 }
 0x9de   :  { %v1406_v55 = vsel %vm716_vm1, %v1386_v36, 0.0  ;;  %v706_v15 = vadd.f32 1e-12, %v705_v63  ;;  %v1346_v61 = vmul.f32 %v1801_v17, %v1266_v46  ;;  %v1805_v11 = vpop.eup %1804  ;;  %v1418_v38 = vsel %vm716_vm1, %v1392_v21, 0.0 }
 0x9df   :  { %v1407_v32 = vadd.f32 %v1406_v55, %v1405_v18 }
 0x9e0   :  { %1810 = vlog2.f32 %v706_v15  ;;  %v1394_v29 = vmul.f32 0.0, %v1346_v61 }
 0x9e1   :  { %v1409_v5 = vadd.f32 %v1408_v6, %v1407_v32  ;;  %v1256_v48 = vpop.xlane.xlu0 %1255  ;;  %v1270_v4 = vpop.xlane.xlu1 %1269 }
 0x9e2   :  { %v1336_v52 = vmul.f32 %v1795_v34, %v1256_v48  ;;  %v1807_v3 = vpop.eup %1806  ;;  %v1350_v0 = vmul.f32 %v1805_v11, %v1270_v4  ;;  %v1422_v47 = vsel %vm716_vm1, %v1394_v29, 0.0 }
 0x9e3   :  { %v1411_v13 = vadd.f32 %v1410_v50, %v1409_v5  ;;  %v1809_v9 = vpop.eup %1808  ;;  %v711_v39 = vmul.f32 0.6931472, %v1807_v3 }
 0x9e4   :  { %v1389_v19 = vmul.f32 0.0, %v1336_v52  ;;  %v1396_v20 = vmul.f32 0.0, %v1350_v0 }
 0x9e5   :  { %v1260_v59 = vpop.xlane.xlu0 %1259 }
 0x9e6   :  { %v1412_v7 = vsel %vm716_vm1, %v1389_v19, 0.0  ;;  %v1340_v31 = vmul.f32 %v1799_v42, %v1260_v59  ;;  %v1426_v60 = vsel %vm716_vm1, %v1396_v20, 0.0 }
 0x9e7   :  { %v1413_v24 = vadd.f32 %v1412_v7, %v1411_v13 }
 0x9e8   :  { %v1391_v54 = vmul.f32 0.0, %v1340_v31 }
 0x9e9   :  { %v1415_v49 = vadd.f32 %v1414_v43, %v1413_v24  ;;  %v1264_v1 = vpop.xlane.xlu0 %1263 }
 0x9ea   :  { %v1416_v25 = vsel %vm716_vm1, %v1391_v54, 0.0  ;;  %v1344_v8 = vmul.f32 %v1803_v51, %v1264_v1 }
 0x9eb   :  { %v1417_v58 = vadd.f32 %v1416_v25, %v1415_v49 }
 0x9ec   :  { %v1393_v40 = vmul.f32 0.0, %v1344_v8 }
 0x9ed   :  { %v1811_v44 = vpop.eup %1810  ;;  %v1419_v2 = vadd.f32 %v1418_v38, %v1417_v58  ;;  %v1268_v33 = vpop.xlane.xlu0 %1267 }
 0x9ee   :  { %v713_v45 = vmul.f32 0.6931472, %v1811_v44  ;;  %v1420_v10 = vsel %vm716_vm1, %v1393_v40, 0.0  ;;  %v1348_v16 = vmul.f32 %v1809_v9, %v1268_v33 }
 0x9ef   :  { %v1421_v37 = vadd.f32 %v1420_v10, %v1419_v2 }
 0x9f0   :  { %v1395_v53 = vmul.f32 0.0, %v1348_v16  ;;  %v714_v23 = vsub.f32 %v711_v39, %v713_v45 }
 0x9f1   :  { %v1423_v30 = vadd.f32 %v1422_v47, %v1421_v37 }
 0x9f2   :  { %v1424_v28 = vsel %vm716_vm1, %v1395_v53, 0.0  ;;  %v717_v57 = vsel %vm716_vm1, %v714_v23, 0.0 }
 0x9f3   :  { %v1425_v27 = vadd.f32 %v1424_v28, %v1423_v30  ;;  %718 = vadd.xlane.f32.xlu0 %v717_v57 }
 0x9f5   :  { %v1427_v62 = vadd.f32 %v1426_v60, %v1425_v27 }
 0x9f7   :  { %1428 = vadd.xlane.f32.xlu1 %v1427_v62 }
 0x9f8   :  { %1843 = shalt.err (!%p1840_p10)
}
 0x9f9   :  { %1454 = dma.vmem_to_hbm [thread:$0]  %s1449_s28, 2048, %s2700_s3, [#allocation4], %s1867_s18, %s1867_s18, %s1868_s19  }
 0x9fa   :  { %s1873_s10 = smov [#allocation7]  }
 0xa7c   :  { %v719_v36 = vpop.xlane.xlu0 %718 }
 0xa7d   :  { %v720_v18 = vrot.slane %v719_v36, 4 }
 0xa7f   :  { %v721_v22 = vadd.f32 %v720_v18, %v719_v36 }
 0xa80   :  { %v1429_v63 = vpop.xlane.xlu1 %1428 }
 0xa81   :  { %v722_v12 = vrot.slane %v721_v22, 2  ;;  %v1430_v55 = vrot.slane %v1429_v63, 4 }
 0xa83   :  { %v723_v15 = vadd.f32 %v722_v12, %v721_v22  ;;  %v1431_v32 = vadd.f32 %v1430_v55, %v1429_v63 }
 0xa85   :  { %v1432_v6 = vrot.slane %v1431_v32, 2  ;;  %v724_v41 = vrot.slane %v723_v15, 1 }
 0xa87   :  { %v1433_v56 = vadd.f32 %v1432_v6, %v1431_v32  ;;  %v725_v34 = vadd.f32 %v724_v41, %v723_v15 }
 0xa89   :  { %1619 = vpush %v725_v34  ;;  %v1434_v5 = vrot.slane %v1433_v56, 1 }
 0xa8b   :  { %v1435_v48 = vadd.f32 %v1434_v5, %v1433_v56 }
 0xa8d   :  { %1621 = vpush %v1435_v48 }
 0xaba   :  { %s1620_s6 = spop %1619 }
 0xabb   :  { %s727_s7 = smul.f32 0.125, %s1620_s6 }
 0xabd   :  { %1440 = sst [smem:[#allocation7]] %s727_s7 }
 0xabe   :  { %s1622_s3 = spop %1621 }
 0xabf   :  { %s1437_s8 = ssub.f32 0.0, %s1622_s3 }
 0xac1   :  { %s1438_s9 = smul.f32 0.125, %s1437_s8 }
 0xac3   :  { %1442 = sst [smem:[#allocation7 + $0x1]] %s1438_s9 }
 0xac4   :  { %1462 = dma.smem_to_hbm %s1873_s10, 16, %s2701_s4, [#allocation5]  }
 0xac5   :  { %1862 = dma.done.wait [#allocation4], 2048  }
 0xac6   :  { %1863 = vsyncadd [#allocation4], 4294965248 }
 0xac7   :  { %1864 = dma.done.wait [#allocation5], 16  }
 0xac8   :  { %1865 = vsyncadd [#allocation5], 4294967280 }
 0xac9   :  { %1469 = sfence }
 0xaca   :  { %1470 = vsyncpa [#allocation3], 1 }
 0xacb   :  { %1471 = vsyncpa [#allocation4], 1 }
 0xacc   :  { %1472 = vsyncpa [#allocation5], 1 }

</bundles_post_ra>
